<compile_context>
chip_gen: v7x
topology: tpu7x:2x2x1
jax: 0.10.0
libtpu: 0.0.40
codegen_flags: <defaults>
</compile_context>

<pallas_src>
import functools

import jax
import jax.numpy as jnp
from jax import lax
from jax.experimental import pallas as pl
from jax.experimental.pallas import tpu as pltpu


def bottleneck_kernel(x_top_ref, x_ref, x_bot_ref,
                      w1_ref, w2_ref, w3_ref,
                      b1_ref, b2_ref, b3_ref,
                      out_ref):
    # x_ref:     (Hb, W, Cin)  current row block (batch dim squeezed)
    # x_top_ref: (1,  W, Cin)  row above the block (clamped at image top)
    # x_bot_ref: (1,  W, Cin)  row below the block (clamped at image bottom)
    Hb, W, Cin = x_ref.shape
    P = w1_ref.shape[1]
    Cout = w3_ref.shape[1]
    Hh = Hb + 2
    M = Hb * W

    r = pl.program_id(1)
    n_r = pl.num_programs(1)

    # ---- conv1 (1x1, BN-scale folded) + bias + relu on the haloed window ----
    x_halo = jnp.concatenate([x_top_ref[...], x_ref[...], x_bot_ref[...]],
                             axis=0)                         # (Hh, W, Cin)
    y1 = jnp.dot(x_halo.reshape(Hh * W, Cin), w1_ref[...],
                 preferred_element_type=jnp.float32)
    y1 = jnp.maximum(y1 + b1_ref[...], 0.0).reshape(Hh, W, P)

    # Halo rows that fall outside the image must be the conv2 zero padding
    # (i.e. zeros of the conv1 output, not conv1 of a clamped row).
    top_keep = (r > 0).astype(y1.dtype)
    bot_keep = (r < n_r - 1).astype(y1.dtype)
    y1 = jnp.concatenate([y1[0:1] * top_keep,
                          y1[1:Hh - 1],
                          y1[Hh - 1:Hh] * bot_keep], axis=0)  # (Hh, W, P)

    # ---- conv2 (3x3, pad=1): im2col along W (K = 3P) + 3 row-shifted matmuls ----
    zcol = jnp.zeros((Hh, 1, P), y1.dtype)
    left = jnp.concatenate([zcol, y1[:, :W - 1, :]], axis=1)   # y1[., w-1, .]
    right = jnp.concatenate([y1[:, 1:, :], zcol], axis=1)      # y1[., w+1, .]
    y1w = jnp.concatenate([left, y1, right], axis=-1)          # (Hh, W, 3P)

    acc = jnp.dot(y1w[0:Hb].reshape(M, 3 * P), w2_ref[0],
                  preferred_element_type=jnp.float32)
    acc = acc + jnp.dot(y1w[1:Hb + 1].reshape(M, 3 * P), w2_ref[1],
                        preferred_element_type=jnp.float32)
    acc = acc + jnp.dot(y1w[2:Hb + 2].reshape(M, 3 * P), w2_ref[2],
                        preferred_element_type=jnp.float32)
    y2 = jnp.maximum(acc + b2_ref[...], 0.0)                   # (M, P)

    # ---- conv3 (1x1) + bias + identity residual + relu ----
    y3 = jnp.dot(y2, w3_ref[...], preferred_element_type=jnp.float32)
    y3 = y3 + b3_ref[...]
    res = x_ref[...].reshape(M, Cin).astype(jnp.float32)       # re-read at use
    out = jnp.maximum(y3 + res, 0.0)
    out_ref[...] = out.reshape(Hb, W, Cout).astype(out_ref.dtype)


def _auto_block_rows(H, W, Cin, itemsize, budget_bytes=512 * 1024):
    """Largest divisor of H whose f32 x-block stays under `budget_bytes`."""
    row_bytes = W * Cin * itemsize
    best = 1
    for d in range(1, H + 1):
        if H % d == 0 and d * row_bytes <= budget_bytes:
            best = d
    return best


@functools.partial(jax.jit, static_argnames=("block_rows",))
def bottleneck_forward(x, w1, w2, w3, b1, b2, b3, *, block_rows=None):
    """x: (B,H,W,Cin); w1:(Cin,P); w2:(3,3P,P); w3:(P,4P); bN:(1,C)."""
    B, H, W, Cin = x.shape
    P = w1.shape[1]
    Cout = w3.shape[1]
    assert Cin == Cout, "identity residual requires inplanes == 4 * planes"

    Hb = block_rows if block_rows is not None else _auto_block_rows(
        H, W, Cin, x.dtype.itemsize)
    assert H % Hb == 0, "block_rows must divide H"
    n_r = H // Hb

    idx_main = lambda b, r: (b, r, 0, 0)
    idx_top = lambda b, r: (b, jnp.maximum(r * Hb - 1, 0), 0, 0)
    idx_bot = lambda b, r: (b, jnp.minimum((r + 1) * Hb, H - 1), 0, 0)
    zero2 = lambda b, r: (0, 0)
    zero3 = lambda b, r: (0, 0, 0)

    itemsize = x.dtype.itemsize
    flops = 2 * B * H * W * (Cin * P + 9 * P * P + P * Cout)
    bytes_accessed = (B * (H + 2 * n_r) * W * Cin * itemsize       # x + halos
                      + B * H * W * Cout * itemsize                 # output
                      + 4 * (Cin * P + 9 * P * P + P * Cout + 2 * P + Cout))

    return pl.pallas_call(
        bottleneck_kernel,
        out_shape=jax.ShapeDtypeStruct((B, H, W, Cout), x.dtype),
        grid_spec=pltpu.PrefetchScalarGridSpec(
            num_scalar_prefetch=0,
            grid=(B, n_r),
            in_specs=[
                pl.BlockSpec((None, 1, W, Cin), idx_top),    # top halo row
                pl.BlockSpec((None, Hb, W, Cin), idx_main),  # main row block
                pl.BlockSpec((None, 1, W, Cin), idx_bot),    # bottom halo row
                pl.BlockSpec((Cin, P), zero2),               # w1 (BN folded)
                pl.BlockSpec((3, 3 * P, P), zero3),          # w2 (BN folded)
                pl.BlockSpec((P, Cout), zero2),              # w3 (BN folded)
                pl.BlockSpec((1, P), zero2),                 # b1
                pl.BlockSpec((1, P), zero2),                 # b2
                pl.BlockSpec((1, Cout), zero2),              # b3
            ],
            out_specs=pl.BlockSpec((None, Hb, W, Cout), idx_main),
        ),
        compiler_params=pltpu.CompilerParams(
            dimension_semantics=("parallel", "parallel"),
            vmem_limit_bytes=32 * 1024 * 1024),
        cost_estimate=pl.CostEstimate(flops=flops, transcendentals=0,
                                      bytes_accessed=bytes_accessed),
    )(x, x, x, w1, w2, w3, b1, b2, b3)


def _fold_bn(gamma, beta, mean, var, eps=1e-5):
    scale = gamma / jnp.sqrt(var + eps)
    bias = beta - mean * scale
    return scale, bias


def prepare_params(w1_hwio, w2_hwio, w3_hwio, bn1, bn2, bn3, eps=1e-5):
    """Fold BN scales into the conv weights; return kernel-layout params."""
    s1, b1 = _fold_bn(*bn1, eps)
    s2, b2 = _fold_bn(*bn2, eps)
    s3, b3 = _fold_bn(*bn3, eps)
    P = w1_hwio.shape[-1]
    w1 = (w1_hwio[0, 0] * s1[None, :]).astype(jnp.float32)            # (Cin, P)
    w2 = (w2_hwio * s2[None, None, None, :]).astype(jnp.float32)
    w2 = w2.reshape(3, 3 * P, P)                                       # (3, 3P, P)
    w3 = (w3_hwio[0, 0] * s3[None, :]).astype(jnp.float32)            # (P, 4P)
    return (w1, w2, w3,
            b1[None, :].astype(jnp.float32),
            b2[None, :].astype(jnp.float32),
            b3[None, :].astype(jnp.float32))


if __name__ == "__main__":
    # Small but layout-friendly shapes: planes=32 -> inplanes = Cout = 128
    # (lane-dense output), H=W=16, two row blocks of 8 rows each.
    B, H, W = 2, 16, 16
    planes = 32
    inplanes = 4 * planes
    Cout = 4 * planes

    key = jax.random.PRNGKey(0)
    ks = jax.random.split(key, 8)

    x = jax.random.normal(ks[0], (B, H, W, inplanes), jnp.float32)
    w1_hwio = jax.random.normal(ks[1], (1, 1, inplanes, planes), jnp.float32) * 0.1
    w2_hwio = jax.random.normal(ks[2], (3, 3, planes, planes), jnp.float32) * 0.1
    w3_hwio = jax.random.normal(ks[3], (1, 1, planes, Cout), jnp.float32) * 0.1

    def bn_params(k, c):
        k1, k2, k3, k4 = jax.random.split(k, 4)
        gamma = 1.0 + 0.1 * jax.random.normal(k1, (c,), jnp.float32)
        beta = 0.1 * jax.random.normal(k2, (c,), jnp.float32)
        mean = 0.1 * jax.random.normal(k3, (c,), jnp.float32)
        var = 0.5 + jax.random.uniform(k4, (c,), jnp.float32)
        return gamma, beta, mean, var

    bn1 = bn_params(ks[4], planes)
    bn2 = bn_params(ks[5], planes)
    bn3 = bn_params(ks[6], Cout)

    w1, w2k, w3, b1, b2, b3 = prepare_params(w1_hwio, w2_hwio, w3_hwio,
                                             bn1, bn2, bn3)

    out = bottleneck_forward(x, w1, w2k, w3, b1, b2, b3, block_rows=8)
    out = jax.block_until_ready(out)

    # Reference: unfused convs + BN (inference) + relu + residual, NHWC.
    s1, rb1 = _fold_bn(*bn1)
    s2, rb2 = _fold_bn(*bn2)
    s3, rb3 = _fold_bn(*bn3)
    dn = ("NHWC", "HWIO", "NHWC")
    y = lax.conv_general_dilated(x, w1_hwio, (1, 1), "VALID", dimension_numbers=dn)
    y = jnp.maximum(y * s1 + rb1, 0.0)
    y = lax.conv_general_dilated(y, w2_hwio, (1, 1), "SAME", dimension_numbers=dn)
    y = jnp.maximum(y * s2 + rb2, 0.0)
    y = lax.conv_general_dilated(y, w3_hwio, (1, 1), "VALID", dimension_numbers=dn)
    ref = jnp.maximum(y * s3 + rb3 + x, 0.0)
    ref = jax.block_until_ready(ref)

    assert out.shape == (B, H, W, Cout)
    err = float(jnp.max(jnp.abs(out - ref)))
    assert err < 1e-3, f"mismatch vs reference: {err}"

    print("KERNEL_OK")
</pallas_src>

<mosaic_0001>
module attributes {stable_mosaic.version = 11 : i64} {
  func.func @bottleneck_kernel(%arg0: i32, %arg1: i32, %arg2: memref<1x1x16x128xf32, #tpu.memory_space<vmem>>, %arg3: memref<1x8x16x128xf32, #tpu.memory_space<vmem>>, %arg4: memref<1x1x16x128xf32, #tpu.memory_space<vmem>>, %arg5: memref<128x32xf32, #tpu.memory_space<vmem>>, %arg6: memref<3x96x32xf32, #tpu.memory_space<vmem>>, %arg7: memref<32x128xf32, #tpu.memory_space<vmem>>, %arg8: memref<1x32xf32, #tpu.memory_space<vmem>>, %arg9: memref<1x32xf32, #tpu.memory_space<vmem>>, %arg10: memref<1x128xf32, #tpu.memory_space<vmem>>, %arg11: memref<1x8x16x128xf32, #tpu.memory_space<vmem>>) attributes {dimension_semantics = [#tpu.dimension_semantics<parallel>, #tpu.dimension_semantics<parallel>], iteration_bounds = array<i64: 2, 2>, scalar_prefetch = 0 : i64, scratch_operands = 0 : i64, tpu.core_type = #tpu.core_type<tc>, window_params = [{transform_indices = @transform_0, window_bounds = array<i64: 1, 1, 16, 128>}, {transform_indices = @transform_1, window_bounds = array<i64: 1, 8, 16, 128>}, {transform_indices = @transform_2, window_bounds = array<i64: 1, 1, 16, 128>}, {pipeline_mode = #tpu.pipeline_mode<synchronous>, transform_indices = @transform_3, window_bounds = array<i64: 128, 32>}, {pipeline_mode = #tpu.pipeline_mode<synchronous>, transform_indices = @transform_4, window_bounds = array<i64: 3, 96, 32>}, {pipeline_mode = #tpu.pipeline_mode<synchronous>, transform_indices = @transform_5, window_bounds = array<i64: 32, 128>}, {pipeline_mode = #tpu.pipeline_mode<synchronous>, transform_indices = @transform_6, window_bounds = array<i64: 1, 32>}, {pipeline_mode = #tpu.pipeline_mode<synchronous>, transform_indices = @transform_7, window_bounds = array<i64: 1, 32>}, {pipeline_mode = #tpu.pipeline_mode<synchronous>, transform_indices = @transform_8, window_bounds = array<i64: 1, 128>}, {transform_indices = @transform_9, window_bounds = array<i64: 1, 8, 16, 128>}]} {
    %c0 = arith.constant 0 : index
    %c0_0 = arith.constant 0 : index
    %c0_1 = arith.constant 0 : index
    %c0_2 = arith.constant 0 : index
    %0 = vector.load %arg2[%c0, %c0_0, %c0_1, %c0_2] : memref<1x1x16x128xf32, #tpu.memory_space<vmem>>, vector<1x1x16x128xf32>
    %1 = vector.shape_cast %0 : vector<1x1x16x128xf32> to vector<1x16x128xf32>
    %c0_3 = arith.constant 0 : index
    %c0_4 = arith.constant 0 : index
    %c0_5 = arith.constant 0 : index
    %c0_6 = arith.constant 0 : index
    %2 = vector.load %arg3[%c0_3, %c0_4, %c0_5, %c0_6] : memref<1x8x16x128xf32, #tpu.memory_space<vmem>>, vector<1x8x16x128xf32>
    %3 = vector.shape_cast %2 : vector<1x8x16x128xf32> to vector<8x16x128xf32>
    %c0_7 = arith.constant 0 : index
    %c0_8 = arith.constant 0 : index
    %c0_9 = arith.constant 0 : index
    %c0_10 = arith.constant 0 : index
    %4 = vector.load %arg4[%c0_7, %c0_8, %c0_9, %c0_10] : memref<1x1x16x128xf32, #tpu.memory_space<vmem>>, vector<1x1x16x128xf32>
    %5 = vector.shape_cast %4 : vector<1x1x16x128xf32> to vector<1x16x128xf32>
    %6 = tpu.concatenate %1, %3, %5 in 0 : vector<1x16x128xf32>, vector<8x16x128xf32>, vector<1x16x128xf32> -> vector<10x16x128xf32>
    %7 = vector.shape_cast %6 : vector<10x16x128xf32> to vector<160x128xf32>
    %c0_11 = arith.constant 0 : index
    %c0_12 = arith.constant 0 : index
    %8 = vector.load %arg5[%c0_11, %c0_12] : memref<128x32xf32, #tpu.memory_space<vmem>>, vector<128x32xf32>
    %cst = arith.constant dense<0.000000e+00> : vector<160x32xf32>
    %9 = tpu.matmul %7, %8, %cst {dimension_numbers = #tpu.dot_dimension_numbers<[1], [0], [0], [1], [0, 0, 1, 1], [], []>} : vector<160x128xf32>, vector<128x32xf32>, vector<160x32xf32> -> vector<160x32xf32>
    %c0_13 = arith.constant 0 : index
    %c0_14 = arith.constant 0 : index
    %10 = vector.load %arg8[%c0_13, %c0_14] : memref<1x32xf32, #tpu.memory_space<vmem>>, vector<1x32xf32>
    %11 = vector.broadcast %10 : vector<1x32xf32> to vector<160x32xf32>
    %12 = arith.addf %9, %11 : vector<160x32xf32>
    %cst_15 = arith.constant 0.000000e+00 : f32
    %13 = vector.broadcast %cst_15 : f32 to vector<160x32xf32>
    %14 = arith.maximumf %12, %13 : vector<160x32xf32>
    %15 = vector.shape_cast %14 : vector<160x32xf32> to vector<10x16x32xf32>
    %c0_i32 = arith.constant 0 : i32
    %16 = arith.cmpi sgt, %arg1, %c0_i32 : i32
    %17 = arith.extui %16 : i1 to i32
    %18 = arith.sitofp %17 : i32 to f32
    %c1_i32 = arith.constant 1 : i32
    %19 = arith.cmpi slt, %arg1, %c1_i32 : i32
    %20 = arith.extui %19 : i1 to i32
    %21 = arith.sitofp %20 : i32 to f32
    %22 = vector.extract_strided_slice %15 {offsets = [0, 0, 0], sizes = [1, 16, 32], strides = [1, 1, 1]} : vector<10x16x32xf32> to vector<1x16x32xf32>
    %23 = vector.broadcast %18 : f32 to vector<1x16x32xf32>
    %24 = arith.mulf %22, %23 : vector<1x16x32xf32>
    %25 = vector.extract_strided_slice %15 {offsets = [1, 0, 0], sizes = [8, 16, 32], strides = [1, 1, 1]} : vector<10x16x32xf32> to vector<8x16x32xf32>
    %26 = vector.extract_strided_slice %15 {offsets = [9, 0, 0], sizes = [1, 16, 32], strides = [1, 1, 1]} : vector<10x16x32xf32> to vector<1x16x32xf32>
    %27 = vector.broadcast %21 : f32 to vector<1x16x32xf32>
    %28 = arith.mulf %26, %27 : vector<1x16x32xf32>
    %29 = tpu.concatenate %24, %25, %28 in 0 : vector<1x16x32xf32>, vector<8x16x32xf32>, vector<1x16x32xf32> -> vector<10x16x32xf32>
    %cst_16 = arith.constant 0.000000e+00 : f32
    %30 = vector.broadcast %cst_16 : f32 to vector<10x1x32xf32>
    %31 = vector.extract_strided_slice %29 {offsets = [0, 0, 0], sizes = [10, 15, 32], strides = [1, 1, 1]} : vector<10x16x32xf32> to vector<10x15x32xf32>
    %32 = tpu.concatenate %30, %31 in 1 : vector<10x1x32xf32>, vector<10x15x32xf32> -> vector<10x16x32xf32>
    %33 = vector.extract_strided_slice %29 {offsets = [0, 1, 0], sizes = [10, 15, 32], strides = [1, 1, 1]} : vector<10x16x32xf32> to vector<10x15x32xf32>
    %34 = tpu.concatenate %33, %30 in 1 : vector<10x15x32xf32>, vector<10x1x32xf32> -> vector<10x16x32xf32>
    %35 = tpu.concatenate %32, %29, %34 in 2 : vector<10x16x32xf32>, vector<10x16x32xf32>, vector<10x16x32xf32> -> vector<10x16x96xf32>
    %36 = vector.extract_strided_slice %35 {offsets = [0, 0, 0], sizes = [8, 16, 96], strides = [1, 1, 1]} : vector<10x16x96xf32> to vector<8x16x96xf32>
    %37 = vector.shape_cast %36 : vector<8x16x96xf32> to vector<128x96xf32>
    %c0_17 = arith.constant 0 : index
    %c0_18 = arith.constant 0 : index
    %c0_19 = arith.constant 0 : index
    %38 = vector.load %arg6[%c0_17, %c0_18, %c0_19] : memref<3x96x32xf32, #tpu.memory_space<vmem>>, vector<1x96x32xf32>
    %39 = vector.shape_cast %38 : vector<1x96x32xf32> to vector<96x32xf32>
    %cst_20 = arith.constant dense<0.000000e+00> : vector<128x32xf32>
    %40 = tpu.matmul %37, %39, %cst_20 {dimension_numbers = #tpu.dot_dimension_numbers<[1], [0], [0], [1], [0, 0, 1, 1], [], []>} : vector<128x96xf32>, vector<96x32xf32>, vector<128x32xf32> -> vector<128x32xf32>
    %41 = vector.extract_strided_slice %35 {offsets = [1, 0, 0], sizes = [8, 16, 96], strides = [1, 1, 1]} : vector<10x16x96xf32> to vector<8x16x96xf32>
    %42 = vector.shape_cast %41 : vector<8x16x96xf32> to vector<128x96xf32>
    %c1 = arith.constant 1 : index
    %c0_21 = arith.constant 0 : index
    %c0_22 = arith.constant 0 : index
    %43 = vector.load %arg6[%c1, %c0_21, %c0_22] : memref<3x96x32xf32, #tpu.memory_space<vmem>>, vector<1x96x32xf32>
    %44 = vector.shape_cast %43 : vector<1x96x32xf32> to vector<96x32xf32>
    %cst_23 = arith.constant dense<0.000000e+00> : vector<128x32xf32>
    %45 = tpu.matmul %42, %44, %cst_23 {dimension_numbers = #tpu.dot_dimension_numbers<[1], [0], [0], [1], [0, 0, 1, 1], [], []>} : vector<128x96xf32>, vector<96x32xf32>, vector<128x32xf32> -> vector<128x32xf32>
    %46 = arith.addf %40, %45 : vector<128x32xf32>
    %47 = vector.extract_strided_slice %35 {offsets = [2, 0, 0], sizes = [8, 16, 96], strides = [1, 1, 1]} : vector<10x16x96xf32> to vector<8x16x96xf32>
    %48 = vector.shape_cast %47 : vector<8x16x96xf32> to vector<128x96xf32>
    %c2 = arith.constant 2 : index
    %c0_24 = arith.constant 0 : index
    %c0_25 = arith.constant 0 : index
    %49 = vector.load %arg6[%c2, %c0_24, %c0_25] : memref<3x96x32xf32, #tpu.memory_space<vmem>>, vector<1x96x32xf32>
    %50 = vector.shape_cast %49 : vector<1x96x32xf32> to vector<96x32xf32>
    %cst_26 = arith.constant dense<0.000000e+00> : vector<128x32xf32>
    %51 = tpu.matmul %48, %50, %cst_26 {dimension_numbers = #tpu.dot_dimension_numbers<[1], [0], [0], [1], [0, 0, 1, 1], [], []>} : vector<128x96xf32>, vector<96x32xf32>, vector<128x32xf32> -> vector<128x32xf32>
    %52 = arith.addf %46, %51 : vector<128x32xf32>
    %c0_27 = arith.constant 0 : index
    %c0_28 = arith.constant 0 : index
    %53 = vector.load %arg9[%c0_27, %c0_28] : memref<1x32xf32, #tpu.memory_space<vmem>>, vector<1x32xf32>
    %54 = vector.broadcast %53 : vector<1x32xf32> to vector<128x32xf32>
    %55 = arith.addf %52, %54 : vector<128x32xf32>
    %cst_29 = arith.constant 0.000000e+00 : f32
    %56 = vector.broadcast %cst_29 : f32 to vector<128x32xf32>
    %57 = arith.maximumf %55, %56 : vector<128x32xf32>
    %c0_30 = arith.constant 0 : index
    %c0_31 = arith.constant 0 : index
    %58 = vector.load %arg7[%c0_30, %c0_31] : memref<32x128xf32, #tpu.memory_space<vmem>>, vector<32x128xf32>
    %cst_32 = arith.constant dense<0.000000e+00> : vector<128x128xf32>
    %59 = tpu.matmul %57, %58, %cst_32 {dimension_numbers = #tpu.dot_dimension_numbers<[1], [0], [0], [1], [0, 0, 1, 1], [], []>} : vector<128x32xf32>, vector<32x128xf32>, vector<128x128xf32> -> vector<128x128xf32>
    %c0_33 = arith.constant 0 : index
    %c0_34 = arith.constant 0 : index
    %60 = vector.load %arg10[%c0_33, %c0_34] : memref<1x128xf32, #tpu.memory_space<vmem>>, vector<1x128xf32>
    %61 = vector.broadcast %60 : vector<1x128xf32> to vector<128x128xf32>
    %62 = arith.addf %59, %61 : vector<128x128xf32>
    %c0_35 = arith.constant 0 : index
    %c0_36 = arith.constant 0 : index
    %c0_37 = arith.constant 0 : index
    %c0_38 = arith.constant 0 : index
    %63 = vector.load %arg3[%c0_35, %c0_36, %c0_37, %c0_38] : memref<1x8x16x128xf32, #tpu.memory_space<vmem>>, vector<1x8x16x128xf32>
    %64 = vector.shape_cast %63 : vector<1x8x16x128xf32> to vector<8x16x128xf32>
    %65 = vector.shape_cast %64 : vector<8x16x128xf32> to vector<128x128xf32>
    %66 = arith.addf %62, %65 : vector<128x128xf32>
    %cst_39 = arith.constant 0.000000e+00 : f32
    %67 = vector.broadcast %cst_39 : f32 to vector<128x128xf32>
    %68 = arith.maximumf %66, %67 : vector<128x128xf32>
    %69 = vector.shape_cast %68 : vector<128x128xf32> to vector<8x16x128xf32>
    %c0_40 = arith.constant 0 : index
    %c0_41 = arith.constant 0 : index
    %c0_42 = arith.constant 0 : index
    %c0_43 = arith.constant 0 : index
    %70 = vector.load %arg11[%c0_40, %c0_41, %c0_42, %c0_43] : memref<1x8x16x128xf32, #tpu.memory_space<vmem>>, vector<1x8x16x128xf32>
    %71 = vector.shape_cast %70 : vector<1x8x16x128xf32> to vector<8x16x128xf32>
    %72 = vector.shape_cast %69 : vector<8x16x128xf32> to vector<1x8x16x128xf32>
    tpu.vector_store %arg11[%c0_40, %c0_41, %c0_42, %c0_43], %72 {strides = array<i32>} : memref<1x8x16x128xf32, #tpu.memory_space<vmem>>, vector<1x8x16x128xf32>,
    return
  }
  func.func @transform_0(%arg0: i32, %arg1: i32) -> (i32, i32, i32, i32) {
    %c8_i32 = arith.constant 8 : i32
    %0 = arith.muli %arg1, %c8_i32 : i32
    %c1_i32 = arith.constant 1 : i32
    %1 = arith.subi %0, %c1_i32 : i32
    %c0_i32 = arith.constant 0 : i32
    %2 = arith.maxsi %1, %c0_i32 : i32
    %c0_i32_0 = arith.constant 0 : i32
    %c0_i32_1 = arith.constant 0 : i32
    %c0_i32_2 = arith.constant 0 : i32
    return %arg0, %2, %c0_i32_0, %c0_i32_1 : i32, i32, i32, i32
  }
  func.func @transform_1(%arg0: i32, %arg1: i32) -> (i32, i32, i32, i32) {
    %c0_i32 = arith.constant 0 : i32
    %c0_i32_0 = arith.constant 0 : i32
    %c0_i32_1 = arith.constant 0 : i32
    return %arg0, %arg1, %c0_i32, %c0_i32_0 : i32, i32, i32, i32
  }
  func.func @transform_2(%arg0: i32, %arg1: i32) -> (i32, i32, i32, i32) {
    %c1_i32 = arith.constant 1 : i32
    %0 = arith.addi %arg1, %c1_i32 : i32
    %c8_i32 = arith.constant 8 : i32
    %1 = arith.muli %0, %c8_i32 : i32
    %c15_i32 = arith.constant 15 : i32
    %2 = arith.minsi %1, %c15_i32 : i32
    %c0_i32 = arith.constant 0 : i32
    %c0_i32_0 = arith.constant 0 : i32
    %c0_i32_1 = arith.constant 0 : i32
    return %arg0, %2, %c0_i32, %c0_i32_0 : i32, i32, i32, i32
  }
  func.func @transform_3(%arg0: i32, %arg1: i32) -> (i32, i32) {
    %c0_i32 = arith.constant 0 : i32
    %c0_i32_0 = arith.constant 0 : i32
    %c0_i32_1 = arith.constant 0 : i32
    return %c0_i32, %c0_i32_0 : i32, i32
  }
  func.func @transform_4(%arg0: i32, %arg1: i32) -> (i32, i32, i32) {
    %c0_i32 = arith.constant 0 : i32
    %c0_i32_0 = arith.constant 0 : i32
    %c0_i32_1 = arith.constant 0 : i32
    %c0_i32_2 = arith.constant 0 : i32
    return %c0_i32, %c0_i32_0, %c0_i32_1 : i32, i32, i32
  }
  func.func @transform_5(%arg0: i32, %arg1: i32) -> (i32, i32) {
    %c0_i32 = arith.constant 0 : i32
    %c0_i32_0 = arith.constant 0 : i32
    %c0_i32_1 = arith.constant 0 : i32
    return %c0_i32, %c0_i32_0 : i32, i32
  }
  func.func @transform_6(%arg0: i32, %arg1: i32) -> (i32, i32) {
    %c0_i32 = arith.constant 0 : i32
    %c0_i32_0 = arith.constant 0 : i32
    %c0_i32_1 = arith.constant 0 : i32
    return %c0_i32, %c0_i32_0 : i32, i32
  }
  func.func @transform_7(%arg0: i32, %arg1: i32) -> (i32, i32) {
    %c0_i32 = arith.constant 0 : i32
    %c0_i32_0 = arith.constant 0 : i32
    %c0_i32_1 = arith.constant 0 : i32
    return %c0_i32, %c0_i32_0 : i32, i32
  }
  func.func @transform_8(%arg0: i32, %arg1: i32) -> (i32, i32) {
    %c0_i32 = arith.constant 0 : i32
    %c0_i32_0 = arith.constant 0 : i32
    %c0_i32_1 = arith.constant 0 : i32
    return %c0_i32, %c0_i32_0 : i32, i32
  }
  func.func @transform_9(%arg0: i32, %arg1: i32) -> (i32, i32, i32, i32) {
    %c0_i32 = arith.constant 0 : i32
    %c0_i32_0 = arith.constant 0 : i32
    %c0_i32_1 = arith.constant 0 : i32
    return %arg0, %arg1, %c0_i32, %c0_i32_0 : i32, i32, i32, i32
  }
}

</mosaic_0001>

<bundles_post_ra>
// kernel: bottleneck_forward.1
= control target key start
LH: loop header
LB: loop body
LE: loop exit
PB: predicated region body
PF: predicated region fallthrough
CT: control target
= control target key end

     0   :  { %14 = vsyncpa [#allocation3], 0  ;;  %s3795_s0 = inlined_call_operand.vmem [shape: f32[2,16,16,128], index: 0, kind: input, shape index: {}, may-alias: {0,1,2}]   ;;  %s3796_s1 = inlined_call_operand.vmem [shape: f32[2,16,16,128], index: 1, kind: input, shape index: {}, may-alias: {0,1,2}]   ;;  %s3797_s2 = inlined_call_operand.vmem [shape: f32[2,16,16,128], index: 2, kind: input, shape index: {}, may-alias: {0,1,2}]   ;;  %s3798_s3 = inlined_call_operand.vmem [shape: f32[128,32], index: 3, kind: input, shape index: {}]   ;;  %s3799_s4 = inlined_call_operand.vmem [shape: f32[3,96,32], index: 4, kind: input, shape index: {}]   ;;  %s3800_s5 = inlined_call_operand.vmem [shape: f32[32,128], index: 5, kind: input, shape index: {}]   ;;  %s3801_s6 = inlined_call_operand.vmem [shape: f32[1,32], index: 6, kind: input, shape index: {}]   ;;  %s3802_s7 = inlined_call_operand.vmem [shape: f32[1,32], index: 7, kind: input, shape index: {}]   ;;  %s3803_s8 = inlined_call_operand.vmem [shape: f32[1,128], index: 8, kind: input, shape index: {}]   ;;  %s3804_s9 = inlined_call_operand.hbm [shape: f32[2,16,16,128], index: 9, kind: output, shape index: {}]  }
   0x1   :  { %16 = vsyncpa [#allocation3 + $0x1], 0  ;;  %s2934_s30 = smov 0   ;;  %s2936_s10 = smov 0  }
   0x2   :  { %s2938_s11 = smov 0   ;;  %s2940_s12 = smov 0  }
   0x3   :  { %s2942_s13 = smov 0   ;;  %s2944_s14 = smov 0  }
   0x4   :  { %s2946_s15 = smov 0   ;;  %s2948_s16 = smov 0  }
   0x5 LB: > { %3809 = sst [smem:[#allocation5_spill]] %s2869_s14  ;;  %s2018_s17 = sadd.s32 4294967295, %s2877_s16   ;;  %s2877_s16 = sphi %s2948_s16, %s22_s16   ;;  %s2873_s15 = sphi %s2946_s15, %s3825_s15   ;;  %s2869_s14 = sphi %s2944_s14, %s3820_s14   ;;  %s2865_s13 = sphi %s2942_s13, %s3819_s13   ;;  %s2861_s12 = sphi %s2940_s12, %s3818_s12   ;;  %s2857_s11 = sphi %s2938_s11, %s3824_s11   ;;  %s2853_s10 = sphi %s2936_s10, %s3823_s10   ;;  %s2849_s30 = sphi %s2934_s30, %s3822_s30  }
   0x6   : > { %3810 = sst [smem:[#allocation6_spill]] %s2873_s15  ;;  %s2019_s18 = sadd.s32 4294967294, %s2877_s16  }
   0x7   : > { %s31_s19 = sadd.s32 1, %s2869_s14  ;;  %s34_s20 = sadd.s32 1, %s2873_s15 }
   0x8   : > { %p32_p0 = scmp.ge.s32.totalorder %s31_s19, 2  ;;  %p279_p1 = scmp.ne.s32.totalorder %s2857_s11, %s2853_s10 }
   0x9   : > { %p280_p2 = scmp.eq.s32.totalorder %s2018_s17, 3  ;;  %p285_p5 = scmp.ne.s32.totalorder %s2853_s10, %s2849_s30 }
   0xa   : > { %s3827_s19 = smov (%p32_p0, %s31_s19), 0  ;;  %s3829_s20 = smov (!%p32_p0, %s34_s20), %s2873_s15 }
   0xb   : > { %3811 = sst [smem:[#allocation7_spill]] %s3827_s19  ;;  %s265_s21 = ssub.s32 %s2869_s14, %s3827_s19 }
   0xc   : > { %p2985_p3 = por %p280_p2, %p279_p1  ;;  %p36_p4 = scmp.ge.s32.totalorder %s3829_s20, 2 }
   0xd   : > { %p286_p6 = scmp.eq.s32.totalorder %s2019_s18, 3  ;;  %p2028_p7 = scmp.ge.s32.totalorder %s2877_s16, 1 }
   0xe   : > { %s3831_s20 = smov (%p36_p4, %s3829_s20), 0  ;;  %p376_p9 = scmp.lt.s32.totalorder %s2877_s16, 5 }
   0xf   : > { %3813 = sst [smem:[#allocation8_spill]] %s3831_s20  ;;  %p2994_p8 = por %p286_p6, %p285_p5 }
  0x10   : > { %s264_s24 = ssub.s32 %s2873_s15, %s3831_s20  ;;  %s269_s25 = sadd.s32 1, %s2857_s11 }
  0x11   : > { %s266_s26 = sor.u32 %s265_s21, %s264_s24  ;;  %p377_p10 = pnand %p2028_p7, %p376_p9 }
  0x12   : > { %p267_p11 = scmp.eq.s32.totalorder %s266_s26, 0  ;;  %v509_v0 = vld [vmem:[%s3798_s3] sm:$0xff] (!%p377_p10)  ;;  %v510_v1 = vld [vmem:[%s3798_s3 + $0x8] sm:$0xff] (!%p377_p10)  ;;  %v511_v2 = vld [vmem:[%s3798_s3 + $0x10] sm:$0xff] (!%p377_p10)  ;;  %s3015_s21 = sshll.u32 (!%p377_p10), %s2861_s12, 3  ;;  %vm810_vm0 = vcmask (!%p377_p10), 1046528  }
  0x13   : > { %380 = sbr.rel (%p377_p10) target bundleno = 963 (0x3c3), region = 56  ;;  %p447_p12 = scmp.lt.s32.totalorder (!%p377_p10), %s2865_s13, 1  ;;  %v2536_v3 = vpack.c.bf16 (!%p377_p10), %v510_v1, %v509_v0  ;;  %v512_v4 = vld [vmem:[%s3798_s3 + $0x18] sm:$0xff] (!%p377_p10)  ;;  %v513_v6 = vld [vmem:[%s3798_s3 + $0x20] sm:$0xff] (!%p377_p10)  ;;  %v514_v7 = vld [vmem:[%s3798_s3 + $0x28] sm:$0xff] (!%p377_p10)  ;;  %vm749_vm1 = vcmask (!%p377_p10), 1040384  }
  0x14   : > { %s3003_s27 = scalar_select %p267_p11, %s2857_s11, %s269_s25  }
  0x15   : > { %s2031_s26 = sadd.s32 (!%p377_p10), 4294967295, %s3015_s21  ;;  %v2540_v5 = vpack.c.bf16 (!%p377_p10), %v512_v4, %v511_v2  ;;  %2537 = vmatprep.subr.bf16.mxu0 (!%p377_p10), %v2536_v3  ;;  %v2544_v8 = vpack.c.bf16 (!%p377_p10), %v514_v7, %v513_v6  ;;  %v515_v9 = vld [vmem:[%s3798_s3 + $0x30] sm:$0xff] (!%p377_p10)  ;;  %v516_v10 = vld [vmem:[%s3798_s3 + $0x38] sm:$0xff] (!%p377_p10)  ;;  %v517_v12 = vld [vmem:[%s3798_s3 + $0x40] sm:$0xff] (!%p377_p10)  ;;  %p463_p1 = scmp.lt.s32.totalorder (!%p377_p10), %s3015_s21, 15  ;;  %vm991_vm2 = vcmask (!%p377_p10), 261120  }
  0x16   : > { %3815 = sst [smem:[#allocation9_spill]] %s3003_s27  ;;  %p445_p13 = scmp.gt.s32.totalorder (!%p377_p10), %s2031_s26, 0  ;;  %2539 = vmatpush3.bf16.msra.mxu0 (!%p377_p10), %v2536_v3  ;;  %v2548_v11 = vpack.c.bf16 (!%p377_p10), %v516_v10, %v515_v9  ;;  %v518_v13 = vld [vmem:[%s3798_s3 + $0x48] sm:$0xff] (!%p377_p10)  ;;  %v519_v16 = vld [vmem:[%s3798_s3 + $0x50] sm:$0xff] (!%p377_p10)  ;;  %v520_v17 = vld [vmem:[%s3798_s3 + $0x58] sm:$0xff] (!%p377_p10)  ;;  %vm1058_vm3 = vcmask (!%p377_p10), 785408  }
  0x17   : > { %p2032_p0 = scmp.lt.s32.totalorder (!%p377_p10), %s2031_s26, 15  ;;  %2541 = vmatprep.subr.bf16.mxu0 (!%p377_p10), %v2540_v5  ;;  %v2552_v15 = vpack.c.bf16 (!%p377_p10), %v518_v13, %v517_v12  ;;  %v2556_v18 = vpack.c.bf16 (!%p377_p10), %v520_v17, %v519_v16  ;;  %v521_v19 = vld [vmem:[%s3798_s3 + $0x60] sm:$0xff] (!%p377_p10)  ;;  %v522_v20 = vld [vmem:[%s3798_s3 + $0x68] sm:$0xff] (!%p377_p10)  ;;  %v523_v22 = vld [vmem:[%s3798_s3 + $0x70] sm:$0xff] (!%p377_p10)  ;;  %p717_p4 = scmp.gt.s32.totalorder (!%p377_p10), %s2861_s12, 0  ;;  %vm1012_vm4 = vcmask (!%p377_p10), 523264  }
  0x18   : > { %v2560_v21 = vpack.c.bf16 (!%p377_p10), %v522_v20, %v521_v19  ;;  %v524_v23 = vld [vmem:[%s3798_s3 + $0x78] sm:$0xff] (!%p377_p10)  ;;  %v2052_v44 = vld [vmem:[%s3799_s4 + $0x60] sm:$0xff] (!%p377_p10)  ;;  %v2053_v45 = vld [vmem:[%s3799_s4 + $0x68] sm:$0xff] (!%p377_p10)  ;;  %s2880_s14 = smov (!%p377_p10), 64   ;;  %p720_p5 = scmp.lt.s32.totalorder (!%p377_p10), %s2861_s12, 1 }
  0x19   : > { %v2564_v24 = vpack.c.bf16 (!%p377_p10), %v524_v23, %v523_v22  ;;  %v2568_v46 = vpack.c.bf16 (!%p377_p10), %v2053_v45, %v2052_v44  ;;  %v2054_v47 = vld [vmem:[%s3799_s4 + $0x70] sm:$0xff] (!%p377_p10)  ;;  %v2055_v48 = vld [vmem:[%s3799_s4 + $0x78] sm:$0xff] (!%p377_p10)  ;;  %v2056_v50 = vld [vmem:[%s3799_s4 + $0x80] sm:$0xff] (!%p377_p10) }
  0x1a   : > { %s448_s19 = scalar_select %p447_p12, %s2865_s13, 1  ;;  %2543 = vmatpush3.bf16.msra.mxu0 %v2540_v5  ;;  %v2572_v49 = vpack.c.bf16 %v2055_v48, %v2054_v47  ;;  %v2057_v51 = vld [vmem:[%s3799_s4 + $0x88] sm:$0xff]  ;;  %v3128_v53 = vld [vmem:[%s3801_s6] ss:$0 sm:$0xff]  ;;  %v2058_v55 = vld [vmem:[%s3799_s4 + $0x90] sm:$0xff] }
  0x1b   : > { %s3833_s26 = smov (!%p445_p13, %s2031_s26), 0  ;;  %2545 = vmatprep.subr.bf16.mxu0 %v2544_v8  ;;  %2648 = vmatprep.subr.bf16.mxu1 %v2568_v46  ;;  %v2576_v52 = vpack.c.bf16 %v2057_v51, %v2056_v50  ;;  %v2059_v56 = vld [vmem:[%s3799_s4 + $0x98] sm:$0xff]  ;;  %v2060_v63 = vld [vmem:[%s3799_s4 + $0xa0] sm:$0xff]  ;;  %v2061_v0 = vld [vmem:[%s3799_s4 + $0xa8] sm:$0xff] }
  0x1c   : > { %s3029_s20 = sshll.u32 %s448_s19, 5  ;;  %s3835_s26 = smov (!%p2032_p0, %s3833_s26), 15  ;;  %2654 = vmatpush3.bf16.msra.mxu1 %v2568_v46  ;;  %v2580_v59 = vpack.c.bf16 %v2059_v56, %v2058_v55  ;;  %v2584_v3 = vpack.c.bf16 %v2061_v0, %v2060_v63  ;;  %v2062_v12 = vld [vmem:[%s3799_s4 + $0xb0] sm:$0xff]  ;;  %v2063_v13 = vld [vmem:[%s3799_s4 + $0xb8] sm:$0xff] }
  0x1d   : > { %s2037_s17 = sshll.u32 %s3835_s26, 1  ;;  %2649 = vmatprep.subr.bf16.mxu1 %v2572_v49 }
  0x1e   : > { %s453_s18 = sadd.s32 %s3029_s20, %s2037_s17  ;;  %2547 = vmatpush3.bf16.msra.mxu0 %v2544_v8 }
  0x1f   : > { %s2039_s25 = sshll.u32 %s453_s18, 3  ;;  %2549 = vmatprep.subr.bf16.mxu0 %v2548_v11 }
  0x20   : > { %s3047_s29 = scalar_lea.vmem %s3795_s0, %s2039_s25  ;;  %2655 = vmatpush3.bf16.msra.mxu1 %v2572_v49 }
  0x21   : > { %v489_v14 = vld [vmem:[%s3047_s29] sm:$0xff]  ;;  %s464_s27 = scalar_select %p463_p1, %s3015_s21, 15  ;;  %v490_v25 = vld [vmem:[%s3047_s29 + $0x8] sm:$0xff]  ;;  %2650 = vmatprep.subr.bf16.mxu1 %v2576_v52 }
  0x22   : > { %2330 = vmatprep.mubr.f32.mxu0 %v489_v14  ;;  %2551 = vmatpush3.bf16.msra.mxu0 %v2548_v11 }
  0x23   : > { %2553 = vmatprep.subr.bf16.mxu0 %v2552_v15  ;;  %s2041_s28 = sshll.u32 %s464_s27, 1 }
  0x24   : > { %s467_s18 = sadd.s32 %s2041_s28, %s3029_s20  ;;  %s2156_s28 = sadd.s32 8, %s3015_s21  ;;  %2656 = vmatpush3.bf16.msra.mxu1 %v2576_v52 }
  0x25   : > { %s2043_s19 = sshll.u32 %s467_s18, 3  ;;  %p3083_p2 = scmp.lt.s32.totalorder %s2156_s28, 15  ;;  %2651 = vmatprep.subr.bf16.mxu1 %v2580_v59 }
  0x26   : > { %2555 = vmatpush3.bf16.msra.mxu0 %v2552_v15  ;;  %s3074_s27 = scalar_lea.vmem %s3796_s1, %s2043_s19 }
  0x27   : > { %2557 = vmatprep.subr.bf16.mxu0 %v2556_v18  ;;  %v491_v26 = vld [vmem:[%s3074_s27] sm:$0xff]  ;;  %v492_v27 = vld [vmem:[%s3074_s27 + $0x8] sm:$0xff]  ;;  %v493_v28 = vld [vmem:[%s3074_s27 + $0x10] sm:$0xff]  ;;  %s3837_s28 = smov (!%p3083_p2, %s2156_s28), 15 }
  0x28   : > { %v494_v29 = vld [vmem:[%s3074_s27 + $0x18] sm:$0xff]  ;;  %v495_v30 = vld [vmem:[%s3074_s27 + $0x20] sm:$0xff]  ;;  %v496_v31 = vld [vmem:[%s3074_s27 + $0x28] sm:$0xff]  ;;  %s3839_s28 = smov (!%p3083_p2, %s3837_s28), 15  ;;  %2657 = vmatpush3.bf16.msra.mxu1 %v2580_v59 }
  0x29   : > { %v497_v32 = vld [vmem:[%s3074_s27 + $0x30] sm:$0xff]  ;;  %v498_v33 = vld [vmem:[%s3074_s27 + $0x38] sm:$0xff]  ;;  %v499_v34 = vld [vmem:[%s3074_s27 + $0x40] sm:$0xff]  ;;  %s2048_s21 = sshll.u32 %s3839_s28, 1  ;;  %2652 = vmatprep.subr.bf16.mxu1 %v2584_v3 }
  0x2a   : > { %2559 = vmatpush3.bf16.msra.mxu0 %v2556_v18  ;;  %v500_v35 = vld [vmem:[%s3074_s27 + $0x48] sm:$0xff]  ;;  %v501_v36 = vld [vmem:[%s3074_s27 + $0x50] sm:$0xff]  ;;  %v502_v37 = vld [vmem:[%s3074_s27 + $0x58] sm:$0xff]  ;;  %s481_s29 = sadd.s32 %s2048_s21, %s3029_s20  ;;  %s2879_s20 = smov 32   ;;  %v2588_v18 = vpack.c.bf16 %v2063_v13, %v2062_v12 }
  0x2b   : > { %2561 = vmatprep.subr.bf16.mxu0 %v2560_v21  ;;  %v503_v38 = vld [vmem:[%s3074_s27 + $0x60] sm:$0xff]  ;;  %s2050_s15 = sshll.u32 %s481_s29, 3  ;;  %v504_v39 = vld [vmem:[%s3074_s27 + $0x68] sm:$0xff]  ;;  %v505_v40 = vld [vmem:[%s3074_s27 + $0x70] sm:$0xff] }
  0x2c   : > { %s483_s18 = scalar_lea.vmem %s3797_s2, %s2050_s15  ;;  %v506_v41 = vld [vmem:[%s3074_s27 + $0x78] sm:$0xff]  ;;  %2658 = vmatpush3.bf16.msra.mxu1 %v2584_v3 }
  0x2d   : > { %v507_v42 = vld [vmem:[%s483_s18] sm:$0xff]  ;;  %v508_v43 = vld [vmem:[%s483_s18 + $0x8] sm:$0xff]  ;;  %s718_s15 = scalar_select %p717_p4, 1, 0  ;;  %2653 = vmatprep.subr.bf16.mxu1 %v2588_v18 }
  0x2e   : > { %2563 = vmatpush3.bf16.msra.mxu0 %v2560_v21  ;;  %s3274_s21 = scalar_select %p720_p5, 1, 0 }
  0x2f   : > { %2565 = vmatprep.subr.bf16.mxu0 %v2564_v24  ;;  %s719_s25 = scvt.s32.f32 %s718_s15 }
  0x30   : > { %2659 = vmatpush3.bf16.msra.mxu1 %v2588_v18  ;;  %s722_s18 = scvt.s32.f32 %s3274_s21  ;;  %s440_s21 = sand.u32 1, %s2853_s10  }
  0x31   : > { %v723_v60 = vstv %s719_s25  ;;  %s2029_s26 = sshll.u32 %s440_s21, 7 }
  0x32   : > { %2567 = vmatpush3.bf16.msra.mxu0 %v2564_v24  ;;  %s3687_s17 = scalar_lea.vmem [#allocation2], %s2029_s26 }
  0x33   : > { %2569 = vmatprep.subr.bf16.mxu0 %v2568_v46 }
  0x35   : > { %2331 = vmatmul.mubr.f32.vlgmr.msra.gmra.mrb[0].mxu0 %v490_v25 }
  0x36   : > { %2333 = vmatprep.mubr.f32.mxu0 %v491_v26  ;;  %2571 = vmatpush3.bf16.msra.mxu0 %v2568_v46 }
  0x37   : > { %2573 = vmatprep.subr.bf16.mxu0 %v2572_v49 }
  0x39   : > { %2334 = vmatmul.mubr.f32.gmra.mrb[2].mxu0 %v492_v27 }
  0x3a   : > { %2336 = vmatprep.mubr.f32.mxu0 %v493_v28  ;;  %2575 = vmatpush3.bf16.msra.mxu0 %v2572_v49 }
  0x3b   : > { %2577 = vmatprep.subr.bf16.mxu0 %v2576_v52 }
  0x3d   : > { %2337 = vmatmul.mubr.f32.gmra.mrb[4].mxu0 %v494_v29 }
  0x3e   : > { %2339 = vmatprep.mubr.f32.mxu0 %v495_v30  ;;  %2579 = vmatpush3.bf16.msra.mxu0 %v2576_v52 }
  0x3f   : > { %2581 = vmatprep.subr.bf16.mxu0 %v2580_v59 }
  0x41   : > { %2340 = vmatmul.mubr.f32.gmra.mrb[6].mxu0 %v496_v31 }
  0x42   : > { %2342 = vmatprep.mubr.f32.mxu0 %v497_v32  ;;  %2583 = vmatpush3.bf16.msra.mxu0 %v2580_v59 }
  0x43   : > { %2585 = vmatprep.subr.bf16.mxu0 %v2584_v3 }
  0x45   : > { %2343 = vmatmul.mubr.f32.gmra.mrb[8].mxu0 %v498_v33 }
  0x46   : > { %2345 = vmatprep.mubr.f32.mxu0 %v499_v34  ;;  %2587 = vmatpush3.bf16.msra.mxu0 %v2584_v3 }
  0x47   : > { %2589 = vmatprep.subr.bf16.mxu0 %v2588_v18 }
  0x49   : > { %2346 = vmatmul.mubr.f32.gmra.mrb[10].mxu0 %v500_v35 }
  0x4a   : > { %2348 = vmatprep.mubr.f32.mxu0 %v501_v36  ;;  %2591 = vmatpush3.bf16.msra.mxu0 %v2588_v18 }
  0x4d   : > { %2349 = vmatmul.mubr.f32.gmra.mrb[12].mxu0 %v502_v37 }
  0x4e   : > { %2351 = vmatprep.mubr.f32.mxu0 %v503_v38 }
  0x51   : > { %2352 = vmatmul.mubr.f32.gmra.mrb[14].mxu0 %v504_v39 }
  0x52   : > { %2354 = vmatprep.mubr.f32.mxu0 %v505_v40 }
  0x55   : > { %2355 = vmatmul.mubr.f32.gmra.mrb[16].mxu0 %v506_v41 }
  0x56   : > { %2357 = vmatprep.mubr.f32.mxu0 %v507_v42 }
  0x59   : > { %2358 = vmatmul.mubr.f32.gmra.mrb[18].mxu0 %v508_v43 }
 0x108   : > { %v2332_v54 = vpop.f32.mrb[0].mxu0 }
 0x109   : > { %v604_v57 = vadd.f32 %v2332_v54, %v3128_v53  ;;  %v598_v58 = vpop.f32.mrb[1].mxu0 }
 0x10a   : > { %v599_v61 = vadd.f32 %v3128_v53, %v598_v58 }
 0x10b   : > { %v698_v62 = vmax.f32 %v604_v57, 0.0 }
 0x10c   : > { %v697_v1 = vmax.f32 %v599_v61, 0.0  ;;  %v2335_v2 = vpop.f32.mrb[2].mxu0 }
 0x10d   : > { %v725_v4 = vmul.f32 %v723_v60, %v698_v62  ;;  %v614_v5 = vadd.f32 %v2335_v2, %v3128_v53  ;;  %v608_v6 = vpop.f32.mrb[3].mxu0 }
 0x10e   : > { %v3145_v7 = vmul.f32 %v723_v60, %v697_v1  ;;  %v609_v8 = vadd.f32 %v3128_v53, %v608_v6 }
 0x10f   : > { %v751_v9 = vrot.slane %v725_v4, 7  ;;  %v3148_v10 = vmax.f32 %v614_v5, 0.0  ;;  %863 = vrot.lane.b32.xlu1 %v725_v4, %s2879_s20  ;;  %v812_v11 = vrot.slane %v725_v4, 1 }
 0x110   : > { %v750_v14 = vrot.slane %v3145_v7, 7  ;;  %v3158_v15 = vmax.f32 %v609_v8, 0.0  ;;  %v2338_v16 = vpop.f32.mrb[4].mxu0  ;;  %861 = vrot.lane.b32.xlu0 %v3145_v7, %s2879_s20  ;;  %v811_v17 = vrot.slane %v3145_v7, 1  ;;  %v2099_v7 = vld [vmem:[%s3799_s4 + $0xd8] sm:$0xff] }
 0x111   : > { %v754_v19 = vrot.slane %v3148_v10, 7  ;;  %v624_v20 = vadd.f32 %v2338_v16, %v3128_v53  ;;  %v618_v21 = vpop.f32.mrb[5].mxu0  ;;  %v815_v22 = vrot.slane %v3148_v10, 1  ;;  %v851_v40 = vsel %vm810_vm0, %v812_v11, 0.0 }
 0x112   : > { %v753_v23 = vrot.slane %v3158_v15, 7  ;;  %v814_v24 = vrot.slane %v3158_v15, 1  ;;  %v619_v25 = vadd.f32 %v3128_v53, %v618_v21  ;;  %v813_v26 = vsel %vm810_vm0, %v811_v17, %v812_v11 }
 0x113   : > { %v3170_v27 = vmax.f32 %v624_v20, 0.0  ;;  %867 = vrot.lane.b32.xlu1 %v3148_v10, %s2879_s20  ;;  %v3177_v28 = vsel %vm749_vm1, %v750_v14, %v751_v9 }
 0x114   : > { %v3179_v29 = vmax.f32 %v619_v25, 0.0  ;;  %v2341_v30 = vpop.f32.mrb[6].mxu0  ;;  %865 = vrot.lane.b32.xlu0 %v3158_v15, %s2879_s20  ;;  %v3186_v31 = vsel %vm810_vm0, %v814_v24, %v815_v22  ;;  %v3191_v32 = vsel %vm749_vm1, %v753_v23, %v754_v19 }
 0x115   : > { %v757_v33 = vrot.slane %v3170_v27, 7  ;;  %v634_v34 = vadd.f32 %v2341_v30, %v3128_v53  ;;  %v628_v35 = vpop.f32.mrb[7].mxu0  ;;  %v818_v36 = vrot.slane %v3170_v27, 1 }
 0x116   : > { %v756_v37 = vrot.slane %v3179_v29, 7  ;;  %v817_v38 = vrot.slane %v3179_v29, 1  ;;  %v629_v39 = vadd.f32 %v3128_v53, %v628_v35 }
 0x117   : > { %v704_v41 = vmax.f32 %v634_v34, 0.0  ;;  %933 = vrot.lane.b32.xlu1 %v851_v40, %s2880_s14 }
 0x118   : > { %v3201_v42 = vmax.f32 %v629_v39, 0.0  ;;  %931 = vrot.lane.b32.xlu0 %v813_v26, %s2880_s14  ;;  %v2344_v43 = vpop.f32.mrb[8].mxu0  ;;  %v3207_v44 = vsel %vm810_vm0, %v817_v38, %v818_v36  ;;  %v3212_v45 = vsel %vm749_vm1, %v756_v37, %v757_v33 }
 0x119   : > { %v760_v46 = vrot.slane %v704_v41, 7  ;;  %v821_v47 = vrot.slane %v704_v41, 1  ;;  %v644_v48 = vadd.f32 %v2344_v43, %v3128_v53  ;;  %v638_v49 = vpop.f32.mrb[9].mxu0  ;;  %v1033_v43 = vld [vmem:[%s3799_s4] sm:$0xff] }
 0x11a   : > { %v759_v50 = vrot.slane %v3201_v42, 7  ;;  %v820_v51 = vrot.slane %v3201_v42, 1  ;;  %v639_v52 = vadd.f32 %v3128_v53, %v638_v49 }
 0x11b   : > { %v854_v54 = vsel %vm810_vm0, %v821_v47, 0.0  ;;  %v706_v55 = vmax.f32 %v644_v48, 0.0 }
 0x11c   : > { %945 = vrot.lane.b32.xlu1 %v854_v54, %s2880_s14  ;;  %875 = vrot.lane.b32.xlu0 %v704_v41, %s2879_s20  ;;  %v3221_v56 = vmax.f32 %v639_v52, 0.0  ;;  %v822_v57 = vsel %vm810_vm0, %v820_v51, %v821_v47  ;;  %v2347_v58 = vpop.f32.mrb[10].mxu0  ;;  %v3227_v59 = vsel %vm749_vm1, %v759_v50, %v760_v46  ;;  %v1034_v46 = vld [vmem:[%s3799_s4 + $0x8] sm:$0xff] }
 0x11d   : > { %v763_v60 = vrot.slane %v706_v55, 7  ;;  %v654_v61 = vadd.f32 %v2347_v58, %v3128_v53  ;;  %v648_v62 = vpop.f32.mrb[11].mxu0  ;;  %v824_v63 = vrot.slane %v706_v55, 1  ;;  %v3294_v58 = vpack.c.bf16 %v1034_v46, %v1033_v43 }
 0x11e   : > { %v762_v0 = vrot.slane %v3221_v56, 7  ;;  %v823_v1 = vrot.slane %v3221_v56, 1  ;;  %v649_v2 = vadd.f32 %v3128_v53, %v648_v62 }
 0x11f   : > { %v3233_v3 = vmax.f32 %v654_v61, 0.0  ;;  %v855_v40 = vsel %vm810_vm0, %v824_v63, 0.0  ;;  %2593 = vmatprep.subr.bf16.mxu1 %v3294_v58 }
 0x120   : > { %943 = vrot.lane.b32.xlu1 %v822_v57, %s2880_s14  ;;  %873 = vrot.lane.b32.xlu0 %v3201_v42, %s2879_s20  ;;  %v3238_v4 = vmax.f32 %v649_v2, 0.0  ;;  %v825_v5 = vsel %vm810_vm0, %v823_v1, %v824_v63  ;;  %v2350_v6 = vpop.f32.mrb[12].mxu0  ;;  %v3244_v8 = vsel %vm749_vm1, %v762_v0, %v763_v60  ;;  %v1037_v42 = vld [vmem:[%s3799_s4 + $0x20] sm:$0xff] }
 0x121   : > { %v766_v9 = vrot.slane %v3233_v3, 7  ;;  %v664_v11 = vadd.f32 %v2350_v6, %v3128_v53  ;;  %v658_v12 = vpop.f32.mrb[13].mxu0  ;;  %v827_v13 = vrot.slane %v3233_v3, 1 }
 0x122   : > { %v765_v16 = vrot.slane %v3238_v4, 7  ;;  %v826_v17 = vrot.slane %v3238_v4, 1  ;;  %v659_v18 = vadd.f32 %v3128_v53, %v658_v12 }
 0x123   : > { %v3253_v19 = vmax.f32 %v664_v11, 0.0 }
 0x124   : > { %879 = vrot.lane.b32.xlu1 %v706_v55, %s2879_s20  ;;  %877 = vrot.lane.b32.xlu0 %v3221_v56, %s2879_s20  ;;  %v3258_v20 = vmax.f32 %v659_v18, 0.0  ;;  %v828_v21 = vsel %vm810_vm0, %v826_v17, %v827_v13  ;;  %v2353_v24 = vpop.f32.mrb[14].mxu0  ;;  %v3264_v25 = vsel %vm749_vm1, %v765_v16, %v766_v9 }
 0x125   : > { %v769_v26 = vrot.slane %v3253_v19, 7  ;;  %v674_v30 = vadd.f32 %v2353_v24, %v3128_v53  ;;  %v668_v33 = vpop.f32.mrb[15].mxu0  ;;  %v830_v34 = vrot.slane %v3253_v19, 1  ;;  %v726_v24 = vstv %s722_s18  ;;  %s2157_s18 = sshll.u32 %s2861_s12, 4 }
 0x126   : > { %v768_v35 = vrot.slane %v3258_v20, 7  ;;  %v829_v38 = vrot.slane %v3258_v20, 1  ;;  %v669_v39 = vadd.f32 %v3128_v53, %v668_v33 }
 0x127   : > { %v712_v41 = vmax.f32 %v674_v30, 0.0  ;;  %v856_v30 = vsel %vm810_vm0, %v827_v13, 0.0 }
 0x128   : > { %949 = vrot.lane.b32.xlu1 %v855_v40, %s2880_s14  ;;  %947 = vrot.lane.b32.xlu0 %v825_v5, %s2880_s14  ;;  %v3285_v47 = vmax.f32 %v669_v39, 0.0  ;;  %v831_v48 = vsel %vm810_vm0, %v829_v38, %v830_v34  ;;  %v2356_v49 = vpop.f32.mrb[16].mxu0  ;;  %v3291_v51 = vsel %vm749_vm1, %v768_v35, %v769_v26 }
 0x129   : > { %v772_v52 = vrot.slane %v712_v41, 7  ;;  %v684_v54 = vadd.f32 %v2356_v49, %v3128_v53  ;;  %v678_v55 = vpop.f32.mrb[17].mxu0  ;;  %v833_v57 = vrot.slane %v712_v41, 1 }
 0x12a   : > { %v771_v60 = vrot.slane %v3285_v47, 7  ;;  %v832_v61 = vrot.slane %v3285_v47, 1  ;;  %v679_v62 = vadd.f32 %v3128_v53, %v678_v55 }
 0x12b   : > { %v714_v63 = vmax.f32 %v684_v54, 0.0 }
 0x12c   : > { %883 = vrot.lane.b32.xlu1 %v3233_v3, %s2879_s20  ;;  %881 = vrot.lane.b32.xlu0 %v3238_v4, %s2879_s20  ;;  %v3305_v1 = vmax.f32 %v679_v62, 0.0  ;;  %v834_v2 = vsel %vm810_vm0, %v832_v61, %v833_v57  ;;  %v2359_v5 = vpop.f32.mrb[18].mxu0  ;;  %v3311_v6 = vsel %vm749_vm1, %v771_v60, %v772_v52  ;;  %v857_v62 = vsel %vm810_vm0, %v830_v34, 0.0 }
 0x12d   : > { %v775_v9 = vrot.slane %v714_v63, 7  ;;  %v836_v11 = vrot.slane %v714_v63, 1  ;;  %v694_v12 = vadd.f32 %v2359_v5, %v3128_v53  ;;  %v688_v17 = vpop.f32.mrb[19].mxu0  ;;  %v1036_v5 = vld [vmem:[%s3799_s4 + $0x18] sm:$0xff] }
 0x12e   : > { %v774_v3 = vrot.slane %v3305_v1, 7  ;;  %v835_v18 = vrot.slane %v3305_v1, 1  ;;  %v689_v26 = vadd.f32 %v3128_v53, %v688_v17 }
 0x12f   : > { %v716_v33 = vmax.f32 %v694_v12, 0.0  ;;  %v859_v34 = vsel %vm810_vm0, %v836_v11, 0.0  ;;  %v803_v12 = vsel %vm749_vm1, 0.0, %v759_v50  ;;  %v1038_v50 = vld [vmem:[%s3799_s4 + $0x28] sm:$0xff] }
 0x130   : > { %953 = vrot.lane.b32.xlu1 %v856_v30, %s2880_s14  ;;  %951 = vrot.lane.b32.xlu0 %v828_v21, %s2880_s14  ;;  %v837_v38 = vsel %vm810_vm0, %v835_v18, %v836_v11  ;;  %v715_v39 = vmax.f32 %v689_v26, 0.0  ;;  %v3324_v40 = vsel %vm749_vm1, %v774_v3, %v775_v9 }
 0x131   : > { %v728_v43 = vmul.f32 %v726_v24, %v716_v33 }
 0x132   : > { %v727_v46 = vmul.f32 %v726_v24, %v715_v39  ;;  %v804_v39 = vsel %vm749_vm1, 0.0, %v762_v0 }
 0x133   : > { %v778_v49 = vrot.slane %v728_v43, 7  ;;  %v839_v52 = vrot.slane %v728_v43, 1 }
 0x134   : > { %887 = vrot.lane.b32.xlu1 %v3253_v19, %s2879_s20  ;;  %885 = vrot.lane.b32.xlu0 %v3258_v20, %s2879_s20  ;;  %v777_v53 = vrot.slane %v727_v46, 7  ;;  %v838_v13 = vrot.slane %v727_v46, 1  ;;  %v858_v19 = vsel %vm810_vm0, %v833_v57, 0.0 }
 0x135   : > { %v860_v21 = vsel %vm810_vm0, %v839_v52, 0.0 }
 0x136   : > { %v840_v54 = vsel %vm810_vm0, %v838_v13, %v839_v52  ;;  %v3333_v55 = vsel %vm749_vm1, %v777_v53, %v778_v49  ;;  %v3336_v61 = vsel %vm749_vm1, 0.0, %v777_v53 }
 0x138   : > { %957 = vrot.lane.b32.xlu1 %v857_v62, %s2880_s14  ;;  %955 = vrot.lane.b32.xlu0 %v831_v48, %s2880_s14  ;;  %v853_v48 = vsel %vm810_vm0, %v818_v36, 0.0 }
 0x13c   : > { %891 = vrot.lane.b32.xlu1 %v712_v41, %s2879_s20  ;;  %889 = vrot.lane.b32.xlu0 %v3285_v47, %s2879_s20  ;;  %v852_v41 = vsel %vm810_vm0, %v815_v22, 0.0 }
 0x140   : > { %961 = vrot.lane.b32.xlu1 %v858_v19, %s2880_s14  ;;  %959 = vrot.lane.b32.xlu0 %v834_v2, %s2880_s14  ;;  %v1035_v2 = vld [vmem:[%s3799_s4 + $0x10] sm:$0xff] }
 0x141   : > { %v2596_v26 = vpack.c.bf16 %v1036_v5, %v1035_v2 }
 0x144   : > { %895 = vrot.lane.b32.xlu1 %v714_v63, %s2879_s20  ;;  %893 = vrot.lane.b32.xlu0 %v3305_v1, %s2879_s20 }
 0x148   : > { %965 = vrot.lane.b32.xlu1 %v859_v34, %s2880_s14  ;;  %963 = vrot.lane.b32.xlu0 %v837_v38, %s2880_s14  ;;  %v2600_v38 = vpack.c.bf16 %v1038_v50, %v1037_v42  ;;  %v805_v34 = vsel %vm749_vm1, 0.0, %v765_v16 }
 0x14c   : > { %937 = vrot.lane.b32.xlu1 %v852_v41, %s2880_s14  ;;  %935 = vrot.lane.b32.xlu0 %v3186_v31, %s2880_s14  ;;  %v1043_v41 = vld [vmem:[%s3799_s4 + $0x50] sm:$0xff] }
 0x150   : > { %871 = vrot.lane.b32.xlu1 %v3170_v27, %s2879_s20  ;;  %869 = vrot.lane.b32.xlu0 %v3179_v29, %s2879_s20  ;;  %v2104_v29 = vld [vmem:[%s3799_s4 + $0x100] sm:$0xff] }
 0x154   : > { %941 = vrot.lane.b32.xlu1 %v853_v48, %s2880_s14  ;;  %939 = vrot.lane.b32.xlu0 %v3207_v44, %s2880_s14  ;;  %v1044_v48 = vld [vmem:[%s3799_s4 + $0x58] sm:$0xff] }
 0x155   : > { %v2612_v16 = vpack.c.bf16 %v1044_v48, %v1043_v41 }
 0x158   : > { %899 = vrot.lane.b32.xlu1 %v728_v43, %s2879_s20  ;;  %897 = vrot.lane.b32.xlu0 %v727_v46, %s2879_s20  ;;  %v1039_v43 = vld [vmem:[%s3799_s4 + $0x30] sm:$0xff]  ;;  %v1040_v46 = vld [vmem:[%s3799_s4 + $0x38] sm:$0xff]  ;;  %s2145_s20 = sshll.u32 %s2865_s13, 5  ;;  %s1891_s13 = sshll.u32 %s3687_s17, 4  ;;  %s3737_s13 = int_to_ptr.vmem [resolvable:$true] %s1891_s13 }
 0x159   : > { %v2604_v0 = vpack.c.bf16 %v1040_v46, %v1039_v43  ;;  %s1888_s19 = sadd.s32 %s2157_s18, %s2145_s20  ;;  %s2783_s29 = scalar_lea.vmem %s3737_s13, 2048 }
 0x15a   : > { %s2146_s12 = sshll.u32 %s1888_s19, 7  ;;  %p2784_p6 = scmp.ne.s32.totalorder %s3737_s13, %s2783_s29 }
 0x15b   : > { %s3735_s28 = scalar_lea.hbm %s3804_s9, %s2146_s12 }
 0x15c   : > { %969 = vrot.lane.b32.xlu1 %v860_v21, %s2880_s14  ;;  %967 = vrot.lane.b32.xlu0 %v840_v54, %s2880_s14  ;;  %v1042_v21 = vld [vmem:[%s3799_s4 + $0x48] sm:$0xff]  ;;  %s3743_s14 = scalar_lea.sflag [#allocation3], %s440_s21  ;;  %p2785_p7 = pnand %p2784_p6, %p2985_p3 }
 0x15e   : > { %p2786_p9 = pneg %p2785_p7 }
 0x181   : > { %v3373_v10 = vpop.permute.xlu1 %863 }
 0x182   : > { %v3375_v22 = vpop.permute.xlu0 %861  ;;  %v993_v15 = vsel %vm991_vm2, %v3177_v28, %v3373_v10 }
 0x185   : > { %v3377_v27 = vpop.permute.xlu1 %867 }
 0x186   : > { %v3379_v31 = vpop.permute.xlu0 %865 }
 0x189   : > { %v3381_v36 = vpop.permute.xlu1 %933 }
 0x18a   : > { %v3383_v57 = vpop.permute.xlu0 %931 }
 0x18e   : > { %v946_v44 = vpop.permute.xlu1 %945  ;;  %v876_v63 = vpop.permute.xlu0 %875 }
 0x18f   : > { %v999_v9 = vsel %vm991_vm2, %v3227_v59, %v876_v63 }
 0x190   : > { %v3403_v30 = vsel %vm1012_vm4, %v999_v9, %v946_v44 }
 0x192   : > { %v944_v11 = vpop.permute.xlu1 %943  ;;  %v874_v17 = vpop.permute.xlu0 %873 }
 0x193   : > { %v998_v18 = vsel %vm991_vm2, %v803_v12, %v874_v17 }
 0x194   : > { %v3398_v24 = vsel %vm1012_vm4, %v998_v18, %v944_v11  ;;  %v2097_v11 = vld [vmem:[%s3799_s4 + $0xc8] sm:$0xff] }
 0x195   : > { %2390 = vmatprep.mubr.msk.f32.mxu1 %vm1058_vm3, %v3398_v24 }
 0x196   : > { %v880_v59 = vpop.permute.xlu1 %879  ;;  %2391 = vmatmul.mubr.msk.f32.vlgmr.msra.gmra.mrb[0].mxu1 %vm1058_vm3, %v3403_v30  ;;  %v878_v33 = vpop.permute.xlu0 %877 }
 0x197   : > { %2595 = vmatpush3.bf16.msra.mxu1 %v3294_v58  ;;  %v1001_v49 = vsel %vm991_vm2, %v3244_v8, %v880_v59  ;;  %v1000_v52 = vsel %vm991_vm2, %v804_v39, %v878_v33  ;;  %v1041_v8 = vld [vmem:[%s3799_s4 + $0x40] sm:$0xff] }
 0x198   : > { %2597 = vmatprep.subr.bf16.mxu1 %v2596_v26  ;;  %v2608_v19 = vpack.c.bf16 %v1042_v21, %v1041_v8 }
 0x19a   : > { %v950_v58 = vpop.permute.xlu1 %949  ;;  %v948_v53 = vpop.permute.xlu0 %947 }
 0x19b   : > { %v3427_v13 = vsel %vm1012_vm4, %v1001_v49, %v950_v58  ;;  %v3430_v56 = vsel %vm1012_vm4, %v1000_v52, %v948_v53  ;;  %2599 = vmatpush3.bf16.msra.mxu1 %v2596_v26  ;;  %v806_v26 = vsel %vm749_vm1, 0.0, %v768_v35 }
 0x19c   : > { %2393 = vmatprep.mubr.msk.f32.mxu1 %vm1058_vm3, %v3430_v56  ;;  %2601 = vmatprep.subr.bf16.mxu1 %v2600_v38 }
 0x19d   : > { %2394 = vmatmul.mubr.msk.f32.gmra.mrb[2].mxu1 %vm1058_vm3, %v3427_v13 }
 0x19e   : > { %v884_v54 = vpop.permute.xlu1 %883  ;;  %v882_v62 = vpop.permute.xlu0 %881 }
 0x19f   : > { %2603 = vmatpush3.bf16.msra.mxu1 %v2600_v38  ;;  %v1003_v44 = vsel %vm991_vm2, %v3264_v25, %v884_v54  ;;  %v1002_v63 = vsel %vm991_vm2, %v805_v34, %v882_v62  ;;  %v2096_v25 = vld [vmem:[%s3799_s4 + $0xc0] sm:$0xff]  ;;  %v800_v62 = vsel %vm749_vm1, 0.0, %v750_v14  ;;  %v801_v14 = vsel %vm749_vm1, 0.0, %v753_v23 }
 0x1a0   : > { %2605 = vmatprep.subr.bf16.mxu1 %v2604_v0  ;;  %v2616_v18 = vpack.c.bf16 %v2097_v11, %v2096_v25  ;;  %v992_v1 = vsel %vm991_vm2, %v800_v62, %v3375_v22  ;;  %v995_v22 = vsel %vm991_vm2, %v3191_v32, %v3377_v27  ;;  %v994_v41 = vsel %vm991_vm2, %v801_v14, %v3379_v31  ;;  %v2100_v32 = vld [vmem:[%s3799_s4 + $0xe0] sm:$0xff]  ;;  %v2101_v27 = vld [vmem:[%s3799_s4 + $0xe8] sm:$0xff] }
 0x1a1   : > { %v2624_v31 = vpack.c.bf16 %v2101_v27, %v2100_v32 }
 0x1a2   : > { %v954_v2 = vpop.permute.xlu1 %953  ;;  %v952_v5 = vpop.permute.xlu0 %951 }
 0x1a3   : > { %v3455_v9 = vsel %vm1012_vm4, %v1003_v44, %v954_v2  ;;  %v3458_v4 = vsel %vm1012_vm4, %v1002_v63, %v952_v5  ;;  %2607 = vmatpush3.bf16.msra.mxu1 %v2604_v0  ;;  %v1014_v2 = vsel %vm1012_vm4, %v993_v15, %v3381_v36  ;;  %v2102_v36 = vld [vmem:[%s3799_s4 + $0xf0] sm:$0xff]  ;;  %v2103_v5 = vld [vmem:[%s3799_s4 + $0xf8] sm:$0xff] }
 0x1a4   : > { %2396 = vmatprep.mubr.msk.f32.mxu1 %vm1058_vm3, %v3458_v4  ;;  %2609 = vmatprep.subr.bf16.mxu1 %v2608_v19 }
 0x1a5   : > { %2397 = vmatmul.mubr.msk.f32.gmra.mrb[4].mxu1 %vm1058_vm3, %v3455_v9 }
 0x1a6   : > { %v888_v12 = vpop.permute.xlu1 %887  ;;  %v886_v17 = vpop.permute.xlu0 %885 }
 0x1a7   : > { %2611 = vmatpush3.bf16.msra.mxu1 %v2608_v19  ;;  %v1005_v42 = vsel %vm991_vm2, %v3291_v51, %v888_v12  ;;  %v1004_v50 = vsel %vm991_vm2, %v806_v26, %v886_v17  ;;  %v807_v51 = vsel %vm749_vm1, 0.0, %v771_v60 }
 0x1a8   : > { %2613 = vmatprep.subr.bf16.mxu1 %v2612_v16 }
 0x1aa   : > { %v958_v59 = vpop.permute.xlu1 %957  ;;  %v956_v33 = vpop.permute.xlu0 %955 }
 0x1ab   : > { %v3477_v38 = vsel %vm1012_vm4, %v1005_v42, %v958_v59  ;;  %v3480_v39 = vsel %vm1012_vm4, %v1004_v50, %v956_v33  ;;  %2615 = vmatpush3.bf16.msra.mxu1 %v2612_v16  ;;  %v802_v16 = vsel %vm749_vm1, 0.0, %v756_v37  ;;  %v2628_v42 = vpack.c.bf16 %v2103_v5, %v2102_v36  ;;  %v2105_v37 = vld [vmem:[%s3799_s4 + $0x108] sm:$0xff]  ;;  %v2106_v50 = vld [vmem:[%s3799_s4 + $0x110] sm:$0xff]  ;;  %v2107_v59 = vld [vmem:[%s3799_s4 + $0x118] sm:$0xff] }
 0x1ac   : > { %2399 = vmatprep.mubr.msk.f32.mxu1 %vm1058_vm3, %v3480_v39  ;;  %2617 = vmatprep.subr.bf16.mxu1 %v2616_v18  ;;  %v2636_v33 = vpack.c.bf16 %v2107_v59, %v2106_v50 }
 0x1ad   : > { %2400 = vmatmul.mubr.msk.f32.gmra.mrb[6].mxu1 %vm1058_vm3, %v3477_v38 }
 0x1ae   : > { %v892_v20 = vpop.permute.xlu1 %891  ;;  %v890_v35 = vpop.permute.xlu0 %889 }
 0x1af   : > { %v1007_v43 = vsel %vm991_vm2, %v3311_v6, %v892_v20  ;;  %v1006_v46 = vsel %vm991_vm2, %v807_v51, %v890_v35  ;;  %v808_v6 = vsel %vm749_vm1, 0.0, %v774_v3  ;;  %v2098_v3 = vld [vmem:[%s3799_s4 + $0xd0] sm:$0xff] }
 0x1b0   : > { %v2620_v63 = vpack.c.bf16 %v2099_v7, %v2098_v3  ;;  %v1624_v51 = vld [vmem:[%s3800_s5 + $0x10] sm:$0xff] }
 0x1b2   : > { %v962_v49 = vpop.permute.xlu1 %961  ;;  %v960_v52 = vpop.permute.xlu0 %959 }
 0x1b3   : > { %v3493_v58 = vsel %vm1012_vm4, %v1007_v43, %v962_v49  ;;  %v3496_v53 = vsel %vm1012_vm4, %v1006_v46, %v960_v52 }
 0x1b4   : > { %2402 = vmatprep.mubr.msk.f32.mxu1 %vm1058_vm3, %v3496_v53 }
 0x1b5   : > { %2403 = vmatmul.mubr.msk.f32.gmra.mrb[8].mxu1 %vm1058_vm3, %v3493_v58 }
 0x1b6   : > { %v896_v47 = vpop.permute.xlu1 %895  ;;  %v894_v60 = vpop.permute.xlu0 %893 }
 0x1b7   : > { %v1009_v0 = vsel %vm991_vm2, %v3324_v40, %v896_v47  ;;  %v1008_v8 = vsel %vm991_vm2, %v808_v6, %v894_v60  ;;  %v1013_v40 = vsel %vm1012_vm4, %v992_v1, %v3383_v57  ;;  %v2124_v47 = vld [vmem:[%s3802_s7] ss:$0 sm:$0xff] }
 0x1ba   : > { %v966_v21 = vpop.permute.xlu1 %965  ;;  %v964_v54 = vpop.permute.xlu0 %963 }
 0x1bb   : > { %v3512_v19 = vsel %vm1012_vm4, %v1009_v0, %v966_v21  ;;  %v3515_v34 = vsel %vm1012_vm4, %v1008_v8, %v964_v54 }
 0x1bc   : > { %2405 = vmatprep.mubr.msk.f32.mxu1 %vm1058_vm3, %v3515_v34 }
 0x1bd   : > { %2406 = vmatmul.mubr.msk.f32.gmra.mrb[10].mxu1 %vm1058_vm3, %v3512_v19 }
 0x1be   : > { %v938_v48 = vpop.permute.xlu1 %937  ;;  %v936_v44 = vpop.permute.xlu0 %935  ;;  %2432 = vmatprep.mubr.msk.f32.mxu1 %vm1058_vm3, %v1013_v40 }
 0x1bf   : > { %v1016_v23 = vsel %vm1012_vm4, %v995_v22, %v938_v48  ;;  %v1015_v57 = vsel %vm1012_vm4, %v994_v41, %v936_v44 }
 0x1c0   : > { %2384 = vmatprep.mubr.msk.f32.mxu0 %vm1058_vm3, %v1015_v57 }
 0x1c1   : > { %2385 = vmatmul.mubr.msk.f32.vlgmr.msra.gmra.mrb[20].mxu0 %vm1058_vm3, %v1016_v23  ;;  %2433 = vmatmul.mubr.msk.f32.vlgmr.msra.gmra.mrb[12].mxu1 %vm1058_vm3, %v1014_v2 }
 0x1c2   : > { %2619 = vmatpush3.bf16.msra.mxu1 %v2616_v18  ;;  %v872_v28 = vpop.permute.xlu1 %871  ;;  %v870_v10 = vpop.permute.xlu0 %869  ;;  %2435 = vmatprep.mubr.msk.f32.mxu1 %vm1058_vm3, %v1015_v57 }
 0x1c3   : > { %2621 = vmatprep.subr.bf16.mxu1 %v2620_v63  ;;  %v997_v25 = vsel %vm991_vm2, %v3212_v45, %v872_v28  ;;  %v996_v11 = vsel %vm991_vm2, %v802_v16, %v870_v10  ;;  %v2632_v45 = vpack.c.bf16 %v2105_v37, %v2104_v29 }
 0x1c5   : > { %2436 = vmatmul.mubr.msk.f32.gmra.mrb[14].mxu1 %vm1058_vm3, %v1016_v23 }
 0x1c6   : > { %v942_v12 = vpop.permute.xlu1 %941  ;;  %v940_v17 = vpop.permute.xlu0 %939  ;;  %2623 = vmatpush3.bf16.msra.mxu1 %v2620_v63 }
 0x1c7   : > { %v1018_v18 = vsel %vm1012_vm4, %v997_v25, %v942_v12  ;;  %v1017_v26 = vsel %vm1012_vm4, %v996_v11, %v940_v17  ;;  %2625 = vmatprep.subr.bf16.mxu1 %v2624_v31 }
 0x1c8   : > { %2387 = vmatprep.mubr.msk.f32.mxu0 %vm1058_vm3, %v1017_v26  ;;  %2438 = vmatprep.mubr.msk.f32.mxu1 %vm1058_vm3, %v1017_v26 }
 0x1c9   : > { %2388 = vmatmul.mubr.msk.f32.gmra.mrb[22].mxu0 %vm1058_vm3, %v1018_v18  ;;  %2439 = vmatmul.mubr.msk.f32.gmra.mrb[0].mxu1 %vm1058_vm3, %v1018_v18 }
 0x1ca   : > { %2441 = vmatprep.mubr.msk.f32.mxu1 %vm1058_vm3, %v3398_v24  ;;  %2627 = vmatpush3.bf16.msra.mxu1 %v2624_v31  ;;  %v898_v20 = vpop.permute.xlu0 %897 }
 0x1cb   : > { %2629 = vmatprep.subr.bf16.mxu1 %v2628_v42 }
 0x1cd   : > { %2442 = vmatmul.mubr.msk.f32.gmra.mrb[2].mxu1 %vm1058_vm3, %v3403_v30 }
 0x1ce   : > { %2444 = vmatprep.mubr.msk.f32.mxu1 %vm1058_vm3, %v3430_v56  ;;  %2631 = vmatpush3.bf16.msra.mxu1 %v2628_v42 }
 0x1cf   : > { %2633 = vmatprep.subr.bf16.mxu1 %v2632_v45 }
 0x1d1   : > { %2445 = vmatmul.mubr.msk.f32.gmra.mrb[4].mxu1 %vm1058_vm3, %v3427_v13 }
 0x1d2   : > { %2447 = vmatprep.mubr.msk.f32.mxu1 %vm1058_vm3, %v3458_v4  ;;  %2635 = vmatpush3.bf16.msra.mxu1 %v2632_v45 }
 0x1d3   : > { %2637 = vmatprep.subr.bf16.mxu1 %v2636_v33 }
 0x1d5   : > { %2448 = vmatmul.mubr.msk.f32.gmra.mrb[6].mxu1 %vm1058_vm3, %v3455_v9 }
 0x1d6   : > { %2450 = vmatprep.mubr.msk.f32.mxu1 %vm1058_vm3, %v3480_v39  ;;  %2639 = vmatpush3.bf16.msra.mxu1 %v2636_v33 }
 0x1d9   : > { %2451 = vmatmul.mubr.msk.f32.gmra.mrb[8].mxu1 %vm1058_vm3, %v3477_v38 }
 0x1da   : > { %2453 = vmatprep.mubr.msk.f32.mxu1 %vm1058_vm3, %v3496_v53 }
 0x1dd   : > { %2454 = vmatmul.mubr.msk.f32.gmra.mrb[10].mxu1 %vm1058_vm3, %v3493_v58 }
 0x1de   : > { %2480 = vmatprep.mubr.msk.f32.mxu1 %vm1058_vm3, %v1017_v26 }
 0x1e1   : > { %2481 = vmatmul.mubr.msk.f32.vlgmr.msra.gmra.mrb[12].mxu1 %vm1058_vm3, %v1018_v18 }
 0x1e2   : > { %2483 = vmatprep.mubr.msk.f32.mxu1 %vm1058_vm3, %v3398_v24  ;;  %v900_v24 = vpop.permute.xlu1 %899 }
 0x1e5   : > { %2484 = vmatmul.mubr.msk.f32.gmra.mrb[14].mxu1 %vm1058_vm3, %v3403_v30  ;;  %v968_v30 = vpop.permute.xlu0 %967 }
 0x1e6   : > { %2486 = vmatprep.mubr.msk.f32.mxu1 %vm1058_vm3, %v3430_v56  ;;  %v970_v56 = vpop.permute.xlu1 %969 }
 0x1e9   : > { %2487 = vmatmul.mubr.msk.f32.gmra.mrb[0].mxu1 %vm1058_vm3, %v3427_v13  ;;  %v1010_v13 = vsel %vm991_vm2, %v3336_v61, %v898_v20  ;;  %v1623_v61 = vld [vmem:[%s3800_s5 + $0x8] sm:$0xff] }
 0x1ea   : > { %2489 = vmatprep.mubr.msk.f32.mxu1 %vm1058_vm3, %v3458_v4  ;;  %v1011_v4 = vsel %vm991_vm2, %v3333_v55, %v900_v24  ;;  %v1625_v55 = vld [vmem:[%s3800_s5 + $0x18] sm:$0xff] }
 0x1eb   : > { %v2644_v43 = vpack.c.bf16 %v1625_v55, %v1624_v51  ;;  %v2767_v55 = vld [vmem:[%s3074_s27 + $0x8] sm:$0xff] }
 0x1ed   : > { %2490 = vmatmul.mubr.msk.f32.gmra.mrb[2].mxu1 %vm1058_vm3, %v3455_v9  ;;  %v1031_v9 = vsel %vm1012_vm4, %v1010_v13, %v968_v30 }
 0x1ee   : > { %2492 = vmatprep.mubr.msk.f32.mxu1 %vm1058_vm3, %v3480_v39  ;;  %v1622_v39 = vld [vmem:[%s3800_s5] sm:$0xff] }
 0x1ef   : > { %v2640_v35 = vpack.c.bf16 %v1623_v61, %v1622_v39 }
 0x1f1   : > { %2493 = vmatmul.mubr.msk.f32.gmra.mrb[4].mxu1 %vm1058_vm3, %v3477_v38  ;;  %v1032_v38 = vsel %vm1012_vm4, %v1011_v4, %v970_v56  ;;  %2641 = vmatprep.subr.bf16.mxu0 %v2640_v35 }
 0x1f2   : > { %2495 = vmatprep.mubr.msk.f32.mxu1 %vm1058_vm3, %v3496_v53  ;;  %2643 = vmatpush3.bf16.msra.mxu0 %v2640_v35 }
 0x1f3   : > { %2645 = vmatprep.subr.bf16.mxu0 %v2644_v43 }
 0x1f5   : > { %2496 = vmatmul.mubr.msk.f32.gmra.mrb[6].mxu1 %vm1058_vm3, %v3493_v58 }
 0x1f6   : > { %2498 = vmatprep.mubr.msk.f32.mxu1 %vm1058_vm3, %v3515_v34  ;;  %2647 = vmatpush3.bf16.msra.mxu0 %v2644_v43 }
 0x1f9   : > { %2499 = vmatmul.mubr.msk.f32.gmra.mrb[8].mxu1 %vm1058_vm3, %v3512_v19 }
 0x1fa   : > { %2501 = vmatprep.mubr.msk.f32.mxu1 %vm1058_vm3, %v1031_v9 }
 0x1fd   : > { %2502 = vmatmul.mubr.msk.f32.gmra.mrb[10].mxu1 %vm1058_vm3, %v1032_v38  ;;  %v3677_v38 = vld [vmem:[%s3803_s8] ss:$0 sm:$0xff] }
 0x294   : > { %v2386_v46 = vpop.f32.mrb[20].mxu0 }
 0x295   : > { %v1173_v49 = vpop.f32.mrb[21].mxu0 }
 0x29c   : > { %v2389_v52 = vpop.f32.mrb[22].mxu0 }
 0x29d   : > { %v1183_v58 = vpop.f32.mrb[23].mxu0 }
 0x2b4   : > { %v2482_v53 = vpop.f32.mrb[12].mxu1 }
 0x2b5   : > { %v2660_v60 = vadd.f32 %v2482_v53, %v2386_v46  ;;  %v1488_v6 = vpop.f32.mrb[13].mxu1  ;;  %v2768_v46 = vld [vmem:[%s3074_s27] sm:$0xff] }
 0x2b6   : > { %v2661_v0 = vadd.f32 %v1488_v6, %v1173_v49 }
 0x2b7   : > { %v1591_v8 = vadd.f32 %v2660_v60, %v2124_v47 }
 0x2b8   : > { %v1590_v21 = vadd.f32 %v2661_v0, %v2124_v47  ;;  %v2485_v54 = vpop.f32.mrb[14].mxu1  ;;  %v2769_v0 = vld [vmem:[%s3074_s27 + $0x18] sm:$0xff] }
 0x2b9   : > { %v2662_v62 = vadd.f32 %v2485_v54, %v2389_v52  ;;  %v1498_v19 = vpop.f32.mrb[15].mxu1  ;;  %v1607_v3 = vmax.f32 %v1591_v8, 0.0 }
 0x2ba   : > { %v1606_v34 = vmax.f32 %v1590_v21, 0.0  ;;  %v2663_v1 = vadd.f32 %v1498_v19, %v1183_v58  ;;  %v2770_v21 = vld [vmem:[%s3074_s27 + $0x10] sm:$0xff] }
 0x2bb   : > { %v1593_v7 = vadd.f32 %v2662_v62, %v2124_v47 }
 0x2bc   : > { %v1592_v14 = vadd.f32 %v2663_v1, %v2124_v47  ;;  %v2488_v40 = vpop.f32.mrb[0].mxu1  ;;  %2512 = vmatprep.mubr.msk.f32.mxu0 %vm991_vm2, %v1606_v34 }
 0x2bd   : > { %v1508_v22 = vpop.f32.mrb[1].mxu1  ;;  %2513 = vmatmul.mubr.msk.f32.vlgmr.msra.gmra.mrb[24].mxu0 %vm991_vm2, %v1607_v3  ;;  %v1609_v44 = vmax.f32 %v1593_v7, 0.0  ;;  %v1595_v15 = vadd.f32 %v2488_v40, %v2124_v47 }
 0x2be   : > { %v1608_v41 = vmax.f32 %v1592_v14, 0.0  ;;  %v1594_v48 = vadd.f32 %v2124_v47, %v1508_v22  ;;  %v2771_v14 = vld [vmem:[%s3074_s27 + $0x28] sm:$0xff]  ;;  %v2772_v22 = vld [vmem:[%s3074_s27 + $0x20] sm:$0xff] }
 0x2bf   : > { %v1611_v32 = vmax.f32 %v1595_v15, 0.0 }
 0x2c0   : > { %v1610_v23 = vmax.f32 %v1594_v48, 0.0  ;;  %v2491_v57 = vpop.f32.mrb[2].mxu1  ;;  %2515 = vmatprep.mubr.msk.f32.mxu0 %vm991_vm2, %v1608_v41 }
 0x2c1   : > { %v1518_v63 = vpop.f32.mrb[3].mxu1  ;;  %2516 = vmatmul.mubr.msk.f32.gmra.mrb[26].mxu0 %vm991_vm2, %v1609_v44  ;;  %v1597_v27 = vadd.f32 %v2491_v57, %v2124_v47 }
 0x2c2   : > { %v1596_v2 = vadd.f32 %v2124_v47, %v1518_v63  ;;  %2518 = vmatprep.mubr.msk.f32.mxu0 %vm991_vm2, %v1610_v23 }
 0x2c3   : > { %v1613_v5 = vmax.f32 %v1597_v27, 0.0  ;;  %v2774_v27 = vld [vmem:[%s3074_s27 + $0x30] sm:$0xff] }
 0x2c4   : > { %v1612_v28 = vmax.f32 %v1596_v2, 0.0  ;;  %v2494_v10 = vpop.f32.mrb[4].mxu1  ;;  %v2773_v2 = vld [vmem:[%s3074_s27 + $0x38] sm:$0xff] }
 0x2c5   : > { %v1528_v31 = vpop.f32.mrb[5].mxu1  ;;  %2519 = vmatmul.mubr.msk.f32.gmra.mrb[28].mxu0 %vm991_vm2, %v1611_v32  ;;  %v1599_v16 = vadd.f32 %v2494_v10, %v2124_v47 }
 0x2c6   : > { %v1598_v36 = vadd.f32 %v2124_v47, %v1528_v31  ;;  %2521 = vmatprep.mubr.msk.f32.mxu0 %vm991_vm2, %v1612_v28 }
 0x2c7   : > { %v1615_v18 = vmax.f32 %v1599_v16, 0.0 }
 0x2c8   : > { %v1614_v25 = vmax.f32 %v1598_v36, 0.0  ;;  %v2497_v11 = vpop.f32.mrb[6].mxu1 }
 0x2c9   : > { %v1538_v12 = vpop.f32.mrb[7].mxu1  ;;  %2522 = vmatmul.mubr.msk.f32.gmra.mrb[30].mxu0 %vm991_vm2, %v1613_v5  ;;  %v1601_v26 = vadd.f32 %v2497_v11, %v2124_v47  ;;  %v2775_v11 = vld [vmem:[%s3074_s27 + $0x48] sm:$0xff] }
 0x2ca   : > { %v1600_v17 = vadd.f32 %v2124_v47, %v1538_v12  ;;  %2524 = vmatprep.mubr.msk.f32.mxu0 %vm991_vm2, %v1614_v25 }
 0x2cb   : > { %v1617_v50 = vmax.f32 %v1601_v26, 0.0 }
 0x2cc   : > { %v1616_v42 = vmax.f32 %v1600_v17, 0.0  ;;  %v2500_v29 = vpop.f32.mrb[8].mxu1  ;;  %v2776_v17 = vld [vmem:[%s3074_s27 + $0x40] sm:$0xff] }
 0x2cd   : > { %v1548_v37 = vpop.f32.mrb[9].mxu1  ;;  %2525 = vmatmul.mubr.msk.f32.gmra.mrb[32].mxu0 %vm991_vm2, %v1615_v18  ;;  %v1603_v59 = vadd.f32 %v2500_v29, %v2124_v47 }
 0x2ce   : > { %v1602_v45 = vadd.f32 %v2124_v47, %v1548_v37  ;;  %2527 = vmatprep.mubr.msk.f32.mxu0 %vm991_vm2, %v1616_v42 }
 0x2cf   : > { %v1619_v13 = vmax.f32 %v1603_v59, 0.0  ;;  %v2777_v59 = vld [vmem:[%s3074_s27 + $0x58] sm:$0xff] }
 0x2d0   : > { %v1618_v33 = vmax.f32 %v1602_v45, 0.0  ;;  %v2503_v20 = vpop.f32.mrb[10].mxu1 }
 0x2d1   : > { %v1558_v24 = vpop.f32.mrb[11].mxu1  ;;  %2528 = vmatmul.mubr.msk.f32.gmra.mrb[34].mxu0 %vm991_vm2, %v1617_v50  ;;  %v1605_v56 = vadd.f32 %v2503_v20, %v2124_v47  ;;  %v2778_v20 = vld [vmem:[%s3074_s27 + $0x50] sm:$0xff] }
 0x2d2   : > { %v1604_v30 = vadd.f32 %v2124_v47, %v1558_v24  ;;  %2530 = vmatprep.mubr.msk.f32.mxu0 %vm991_vm2, %v1618_v33 }
 0x2d3   : > { %v1621_v4 = vmax.f32 %v1605_v56, 0.0 }
 0x2d4   : > { %v1620_v9 = vmax.f32 %v1604_v30, 0.0 }
 0x2d5   : > { %2531 = vmatmul.mubr.msk.f32.gmra.mrb[36].mxu0 %vm991_vm2, %v1619_v13 }
 0x2d6   : > { %2533 = vmatprep.mubr.msk.f32.mxu0 %vm991_vm2, %v1620_v9 }
 0x2d9   : > { %2534 = vmatmul.mubr.msk.f32.gmra.mrb[38].mxu0 %vm991_vm2, %v1621_v4 }
 0x390   : > { %v2514_v39 = vpop.f32.mrb[24].mxu0 }
 0x391   : > { %v1753_v61 = vadd.f32 %v2514_v39, %v3677_v38  ;;  %v1747_v35 = vpop.f32.mrb[25].mxu0 }
 0x392   : > { %v1748_v51 = vadd.f32 %v3677_v38, %v1747_v35 }
 0x393   : > { %v1827_v43 = vadd.f32 %v2767_v55, %v1753_v61  ;;  %v2779_v61 = vld [vmem:[%s3074_s27 + $0x68] sm:$0xff] }
 0x394   : > { %v1826_v49 = vadd.f32 %v2768_v46, %v1748_v51  ;;  %v2517_v52 = vpop.f32.mrb[26].mxu0  ;;  %v2780_v51 = vld [vmem:[%s3074_s27 + $0x60] sm:$0xff] }
 0x395   : > { %v1843_v58 = vmax.f32 %v1827_v43, 0.0  ;;  %v1763_v53 = vadd.f32 %v2517_v52, %v3677_v38  ;;  %v1757_v47 = vpop.f32.mrb[27].mxu0 }
 0x396   : > { %v1842_v60 = vmax.f32 %v1826_v49, 0.0  ;;  %v1758_v6 = vadd.f32 %v3677_v38, %v1757_v47  ;;  %v2781_v47 = vld [vmem:[%s3074_s27 + $0x78] sm:$0xff] }
 0x397   : > { %1859 = vst [vmem:[%s3687_s17 + $0x8] sm:$0xff] %v1843_v58  ;;  %v1829_v8 = vadd.f32 %v2769_v0, %v1763_v53 }
 0x398   : > { %1858 = vst [vmem:[%s3687_s17] sm:$0xff] %v1842_v60  ;;  %v1828_v54 = vadd.f32 %v2770_v21, %v1758_v6  ;;  %v2520_v62 = vpop.f32.mrb[28].mxu0  ;;  %v2782_v6 = vld [vmem:[%s3074_s27 + $0x70] sm:$0xff]  ;;  %s2881_s27 = smov [#allocation2]  }
 0x399   : > { %v1845_v19 = vmax.f32 %v1829_v8, 0.0  ;;  %v1773_v34 = vadd.f32 %v2520_v62, %v3677_v38  ;;  %v1767_v1 = vpop.f32.mrb[29].mxu0  ;;  %s2787_s15 = sshll.u32 %s2881_s27, 4  ;;  %s2788_s15 = int_to_ptr.vmem [resolvable:$false] %s2787_s15 }
 0x39a   : > { %v1844_v3 = vmax.f32 %v1828_v54, 0.0  ;;  %v1768_v7 = vadd.f32 %v3677_v38, %v1767_v1  ;;  %s2789_s26 = scalar_lea.vmem %s2788_s15, 4096  ;;  %p2790_p10 = scmp.lt.s32.totalorder %s3737_s13, %s2788_s15 }
 0x39b   : > { %1861 = vst [vmem:[%s3687_s17 + $0x18] sm:$0xff] %v1845_v19  ;;  %v1831_v40 = vadd.f32 %v2771_v14, %v1773_v34  ;;  %p2791_p11 = scmp.lt.s32.totalorder %s2789_s26, %s2783_s29 }
 0x39c   : > { %1860 = vst [vmem:[%s3687_s17 + $0x10] sm:$0xff] %v1844_v3  ;;  %v1830_v41 = vadd.f32 %v2772_v22, %v1768_v7  ;;  %v2523_v48 = vpop.f32.mrb[30].mxu0 }
 0x39d   : > { %v1847_v44 = vmax.f32 %v1831_v40, 0.0  ;;  %v1783_v15 = vadd.f32 %v2523_v48, %v3677_v38  ;;  %v1777_v23 = vpop.f32.mrb[31].mxu0  ;;  %p2792_p12 = por %p2791_p11, %p2790_p10 }
 0x39e   : > { %v1846_v57 = vmax.f32 %v1830_v41, 0.0  ;;  %v1778_v63 = vadd.f32 %v3677_v38, %v1777_v23 }
 0x39f   : > { %1863 = vst [vmem:[%s3687_s17 + $0x28] sm:$0xff] %v1847_v44  ;;  %v1833_v32 = vadd.f32 %v2773_v2, %v1783_v15  ;;  %p2793_p13 = pnand %p2792_p12, %p2786_p9 }
 0x3a0   : > { %1862 = vst [vmem:[%s3687_s17 + $0x20] sm:$0xff] %v1846_v57  ;;  %v1832_v28 = vadd.f32 %v2774_v27, %v1778_v63  ;;  %v2526_v10 = vpop.f32.mrb[32].mxu0 }
 0x3a1   : > { %v1849_v31 = vmax.f32 %v1833_v32, 0.0  ;;  %v1793_v36 = vadd.f32 %v2526_v10, %v3677_v38  ;;  %v1787_v5 = vpop.f32.mrb[33].mxu0 }
 0x3a2   : > { %v1848_v16 = vmax.f32 %v1832_v28, 0.0  ;;  %v1788_v25 = vadd.f32 %v3677_v38, %v1787_v5 }
 0x3a3   : > { %1865 = vst [vmem:[%s3687_s17 + $0x38] sm:$0xff] %v1849_v31  ;;  %v1835_v12 = vadd.f32 %v2775_v11, %v1793_v36 }
 0x3a4   : > { %1864 = vst [vmem:[%s3687_s17 + $0x30] sm:$0xff] %v1848_v16  ;;  %v1834_v18 = vadd.f32 %v2776_v17, %v1788_v25  ;;  %v2529_v26 = vpop.f32.mrb[34].mxu0 }
 0x3a5   : > { %v1851_v42 = vmax.f32 %v1835_v12, 0.0  ;;  %v1803_v29 = vadd.f32 %v2529_v26, %v3677_v38  ;;  %v1797_v37 = vpop.f32.mrb[35].mxu0 }
 0x3a6   : > { %v1850_v45 = vmax.f32 %v1834_v18, 0.0  ;;  %v1798_v50 = vadd.f32 %v3677_v38, %v1797_v37 }
 0x3a7   : > { %1867 = vst [vmem:[%s3687_s17 + $0x48] sm:$0xff] %v1851_v42  ;;  %v1837_v33 = vadd.f32 %v2777_v59, %v1803_v29 }
 0x3a8   : > { %1866 = vst [vmem:[%s3687_s17 + $0x40] sm:$0xff] %v1850_v45  ;;  %v1836_v24 = vadd.f32 %v2778_v20, %v1798_v50  ;;  %v2532_v30 = vpop.f32.mrb[36].mxu0 }
 0x3a9   : > { %v1853_v13 = vmax.f32 %v1837_v33, 0.0  ;;  %v1813_v56 = vadd.f32 %v2532_v30, %v3677_v38  ;;  %v1807_v9 = vpop.f32.mrb[37].mxu0 }
 0x3aa   : > { %v1852_v4 = vmax.f32 %v1836_v24, 0.0  ;;  %v1808_v39 = vadd.f32 %v3677_v38, %v1807_v9 }
 0x3ab   : > { %1869 = vst [vmem:[%s3687_s17 + $0x58] sm:$0xff] %v1853_v13  ;;  %v1839_v35 = vadd.f32 %v2779_v61, %v1813_v56 }
 0x3ac   : > { %1868 = vst [vmem:[%s3687_s17 + $0x50] sm:$0xff] %v1852_v4  ;;  %v1838_v55 = vadd.f32 %v2780_v51, %v1808_v39  ;;  %v2535_v43 = vpop.f32.mrb[38].mxu0 }
 0x3ad   : > { %v1855_v46 = vmax.f32 %v1839_v35, 0.0  ;;  %v1823_v49 = vadd.f32 %v2535_v43, %v3677_v38  ;;  %v1817_v52 = vpop.f32.mrb[39].mxu0 }
 0x3ae   : > { %v1854_v58 = vmax.f32 %v1838_v55, 0.0  ;;  %v1818_v53 = vadd.f32 %v3677_v38, %v1817_v52 }
 0x3af   : > { %1871 = vst [vmem:[%s3687_s17 + $0x68] sm:$0xff] %v1855_v46  ;;  %v1841_v60 = vadd.f32 %v2781_v47, %v1823_v49 }
 0x3b0   : > { %1870 = vst [vmem:[%s3687_s17 + $0x60] sm:$0xff] %v1854_v58  ;;  %v1840_v0 = vadd.f32 %v2782_v6, %v1818_v53 }
 0x3b1   : > { %v1857_v8 = vmax.f32 %v1841_v60, 0.0 }
 0x3b2   : > { %v1856_v38 = vmax.f32 %v1840_v0, 0.0 }
 0x3b3   : > { %1873 = vst [vmem:[%s3687_s17 + $0x78] sm:$0xff] %v1857_v8 }
 0x3b4   : > { %1872 = vst [vmem:[%s3687_s17 + $0x70] sm:$0xff] %v1856_v38 }
 0x3b5   : > { %2796 = shalt.err (!%p2793_p13)
}
 0x3b6   : > { %s2797_s21 = scalar_lea.hbm %s3735_s28, 2048  ;;  %s2801_s20 = scalar_lea.hbm %s3804_s9, 8192 }
 0x3b7   : > { %p2798_p0 = scmp.ne.s32.totalorder %s3735_s28, %s2797_s21  ;;  %p2802_p4 = scmp.lt.u32.totalorder %s3735_s28, %s3804_s9 }
 0x3b8   : > { %p2803_p5 = scmp.lt.u32.totalorder %s2801_s20, %s2797_s21  ;;  %p2805_p7 = scmp.lt.u32.totalorder %s2797_s21, %s3735_s28 }
 0x3b9   : > { %p2799_p1 = pnand %p2798_p0, %p2985_p3 }
 0x3ba   : > { %p2804_p6 = por %p2803_p5, %p2802_p4 }
 0x3bb   : > { %p2800_p2 = pneg %p2799_p1 }
 0x3bc   : > { %p2806_p9 = por %p2805_p7, %p2804_p6 }
 0x3be   : > { %p2807_p10 = pnand %p2806_p9, %p2800_p2 }
 0x3c0   : > { %2810 = shalt.err (!%p2807_p10)
}
 0x3c1   : > { %s2882_s24 = smov 128   ;;  %s2883_s25 = smov 8  }
 0x3c2   : > { %2692 = dma.vmem_to_hbm [thread:$0]  (%p2985_p3), %s3737_s13, 2048, %s3735_s28, %s3743_s14, %s2882_s24, %s2882_s24, %s2883_s25  }
 0x3c3 PF: > { %p2698_p11 = scmp.ge.s32.totalorder %s2877_s16, 2  ;;  %s1906_s29 = sand.u32 1, %s2849_s30  }
 0x3c4   : > { %s1907_s27 = scalar_lea.sflag [#allocation3], %s1906_s29 }
 0x3c5   : > { %p2695_p12 = pnand %p2698_p11, %p2994_p8 }
 0x3c7   : > { %2844 = dma.done.wait (!%p2695_p12), %s1907_s27, 2048  }
 0x3c8   : > { %2846 = vsyncadd (!%p2695_p12), %s1907_s27, 4294965248  ;;  %s22_s16 = sadd.s32 1, %s2877_s16   ;;  %s3817_s15 = sld [smem:[#allocation9_spill]] }
 0x3c9   : > { %p19_p13 = scmp.ge.s32.totalorder %s22_s16, 6   ;;  %s3818_s12 = sld [smem:[#allocation5_spill]] }
 0x3ca   : > { %s3819_s13 = sld [smem:[#allocation6_spill]]  ;;  %s3820_s14 = sld [smem:[#allocation7_spill]] }
 0x3cb   : > { %s3821_s22 = sld [smem:[#allocation8_spill]]  ;;  %s3822_s30 = smov %s2853_s10 }
 0x3cc   : > { %s3823_s10 = smov %s2857_s11  ;;  %21 = sbr.rel (!%p19_p13) target bundleno = 5 (0x5), region = 99 }
 0x3ce   : > { %s3824_s11 = smov %s3817_s15 }
 0x3d1   : > { %s3825_s15 = smov %s3821_s22 }
 0x3d3   :  { %1912 = vsyncpa [#allocation3], 1 }
 0x3d4   :  { %1914 = vsyncpa [#allocation3 + $0x1], 1 }

</bundles_post_ra>
